<compile_context>
chip_gen: v5e
topology: v5e:2x2
jax: 0.10.0
libtpu: 0.0.40
codegen_flags: <defaults>
</compile_context>

<pallas_src>
import functools

import jax
import jax.numpy as jnp
from jax.experimental import pallas as pl
from jax.experimental.pallas import tpu as pltpu


def _ohem_kernel(pred_ref, tgt_ref, out_ref, loss_buf, *, keep_num, inv_keep):
    i = pl.program_id(0)

    x = pred_ref[...].astype(jnp.float32)      # (C, T) logits, classes on sublanes
    t = tgt_ref[...]                           # (1, T) int32 targets
    C, T = x.shape

    # ---- per-sample cross entropy with ignore_index = -1 (lane-dense (1,T)) ----
    m = jnp.max(x, axis=0, keepdims=True)                                   # (1, T)
    lse = jnp.log(jnp.sum(jnp.exp(x - m), axis=0, keepdims=True)) + m       # (1, T)
    cls = jax.lax.broadcasted_iota(jnp.int32, (C, T), 0)                    # class ids
    picked = jnp.sum(jnp.where(cls == t, x, 0.0), axis=0, keepdims=True)    # (1, T)
    valid = t != -1
    loss = jnp.where(valid, jnp.maximum(lse - picked, 0.0), 0.0)            # (1, T), >= 0

    # lane-dense row i of the persistent loss scratch
    loss_buf[i] = loss

    # ---- last step: exact top-keep_num sum via bit-pattern bisection ----
    @pl.when(i == pl.num_programs(0) - 1)
    def _():
        lv = loss_buf[...]                          # (n_tiles, 1, T) f32, all >= 0
        bits = pltpu.bitcast(lv, jnp.int32)         # order-preserving for x >= 0

        # Greedy MSB->LSB search for the largest threshold with
        # count(loss >= thr) >= keep_num  ==  bit pattern of the keep_num-th
        # largest loss.  Padded rows carry loss 0.0 (bits 0) and never pass a
        # positive candidate, so padding cannot perturb the counts.
        thr = jnp.int32(0)
        for b in range(30, -1, -1):                 # sign bit is always 0
            cand = thr | jnp.int32(1 << b)
            cnt = jnp.sum((bits >= cand).astype(jnp.int32))
            thr = jnp.where(cnt >= keep_num, cand, thr)

        gt = bits > thr                             # strictly above threshold
        sum_gt = jnp.sum(jnp.where(gt, lv, 0.0))
        cnt_gt = jnp.sum(gt.astype(jnp.int32)).astype(jnp.float32)
        thr_val = jnp.max(jnp.where(bits <= thr, lv, 0.0))   # float value at thr
        total = sum_gt + (jnp.float32(keep_num) - cnt_gt) * thr_val
        out_ref[0, 0] = total * jnp.float32(inv_keep)


def ohem_loss(cls_pred: jax.Array, cls_target: jax.Array,
              rate: float = 0.8, tile_n: int = 128) -> jax.Array:
    """cls_pred: (N, C) float; cls_target: (N,) int (class id or -1)."""
    N, C = cls_pred.shape
    keep_num = min(N, int(N * rate))         # matches the PyTorch module
    keep_num = max(keep_num, 1)              # guard int(N*rate)==0 (torch would divide by 0)

    n_tiles = (N + tile_n - 1) // tile_n
    n_pad = n_tiles * tile_n

    # Batch on lanes: (C, N_pad) logits (native dtype), (1, N_pad) targets.
    # Padded rows get target = -1 -> loss 0, never selected above any positive loss.
    pred_t = jnp.transpose(cls_pred)
    tgt = cls_target.reshape(1, N).astype(jnp.int32)
    if n_pad != N:
        pred_t = jnp.pad(pred_t, ((0, 0), (0, n_pad - N)))
        tgt = jnp.pad(tgt, ((0, 0), (0, n_pad - N)), constant_values=-1)

    kernel = functools.partial(_ohem_kernel, keep_num=keep_num, inv_keep=1.0 / keep_num)

    cost = pl.CostEstimate(
        flops=6 * n_pad * C + 2 * 31 * n_pad,
        transcendentals=n_pad * C,
        bytes_accessed=n_pad * C * pred_t.dtype.itemsize + n_pad * 4 + 4,
    )

    out = pl.pallas_call(
        kernel,
        out_shape=jax.ShapeDtypeStruct((1, 1), jnp.float32),
        grid_spec=pltpu.PrefetchScalarGridSpec(
            num_scalar_prefetch=0,
            grid=(n_tiles,),
            in_specs=[
                pl.BlockSpec((C, tile_n), lambda i: (0, i)),   # logits tile
                pl.BlockSpec((1, tile_n), lambda i: (0, i)),   # targets tile
            ],
            out_specs=pl.BlockSpec(memory_space=pltpu.MemorySpace.SMEM),
            scratch_shapes=[pltpu.VMEM((n_tiles, 1, tile_n), jnp.float32)],
        ),
        compiler_params=pltpu.CompilerParams(dimension_semantics=("arbitrary",)),
        cost_estimate=cost,
    )(pred_t, tgt)
    return out[0, 0]


def _ohem_loss_ref(cls_pred, cls_target, rate=0.8):
    """Pure-JAX reference mirroring the PyTorch forward."""
    N, C = cls_pred.shape
    logp = jax.nn.log_softmax(cls_pred.astype(jnp.float32), axis=-1)
    safe_t = jnp.where(cls_target == -1, 0, cls_target)
    nll = -jnp.take_along_axis(logp, safe_t[:, None], axis=-1)[:, 0]
    nll = jnp.where(cls_target == -1, 0.0, nll)
    keep_num = max(1, min(N, int(N * rate)))
    top = jax.lax.top_k(nll, keep_num)[0]
    return jnp.sum(top) / keep_num


if __name__ == "__main__":
    key = jax.random.PRNGKey(0)
    k1, k2, k3, k4 = jax.random.split(key, 4)

    # --- case 1: single tile, with an ignored row --------------------------
    N1, C1, rate1 = 8, 32, 0.8           # keep_num = 6
    pred1 = jax.random.normal(k1, (N1, C1), dtype=jnp.float32)
    tgt1 = jax.random.randint(k2, (N1,), 0, C1, dtype=jnp.int32)
    tgt1 = tgt1.at[3].set(-1)            # exercise ignore_index = -1
    out1 = jax.block_until_ready(ohem_loss(pred1, tgt1, rate1))
    ref1 = jax.block_until_ready(_ohem_loss_ref(pred1, tgt1, rate1))
    assert jnp.allclose(out1, ref1, rtol=1e-5, atol=1e-5), (out1, ref1)

    # --- case 2: multiple row tiles + padding -------------------------------
    N2, C2, rate2 = 200, 32, 0.75        # keep_num = 150, n_tiles = 2, padded to 256
    pred2 = 2.0 * jax.random.normal(k3, (N2, C2), dtype=jnp.float32)
    tgt2 = jax.random.randint(k4, (N2,), 0, C2, dtype=jnp.int32)
    tgt2 = tgt2.at[7].set(-1)
    tgt2 = tgt2.at[100].set(-1)
    out2 = jax.block_until_ready(ohem_loss(pred2, tgt2, rate2))
    ref2 = jax.block_until_ready(_ohem_loss_ref(pred2, tgt2, rate2))
    assert jnp.allclose(out2, ref2, rtol=1e-5, atol=1e-5), (out2, ref2)

    print("KERNEL_OK")
</pallas_src>

<mosaic_0001>
module attributes {stable_mosaic.version = 11 : i64} {
  func.func @_ohem_kernel(%arg0: i32, %arg1: memref<32x128xf32, #tpu.memory_space<vmem>>, %arg2: memref<1x128xi32, #tpu.memory_space<vmem>>, %arg3: memref<1x1xf32, #tpu.memory_space<smem>>, %arg4: memref<1x1x128xf32, #tpu.memory_space<vmem>>) attributes {dimension_semantics = [#tpu.dimension_semantics<arbitrary>], iteration_bounds = array<i64: 1>, scalar_prefetch = 0 : i64, scratch_operands = 1 : i64, tpu.core_type = #tpu.core_type<tc>, window_params = [{transform_indices = @transform_0, window_bounds = array<i64: 32, 128>}, {transform_indices = @transform_1, window_bounds = array<i64: 1, 128>}, {transform_indices = @transform_2, window_bounds = array<i64: 1, 1>}]} {
    %c0 = arith.constant 0 : index
    %c0_0 = arith.constant 0 : index
    %0 = vector.load %arg1[%c0, %c0_0] : memref<32x128xf32, #tpu.memory_space<vmem>>, vector<32x128xf32>
    %c0_1 = arith.constant 0 : index
    %c0_2 = arith.constant 0 : index
    %1 = vector.load %arg2[%c0_1, %c0_2] : memref<1x128xi32, #tpu.memory_space<vmem>>, vector<1x128xi32>
    %cst = arith.constant dense<0xFF800000> : vector<128xf32>
    %2 = vector.multi_reduction <maximumf>, %0, %cst [0] : vector<32x128xf32> to vector<128xf32>
    %3 = vector.shape_cast %2 : vector<128xf32> to vector<1x128xf32>
    %4 = vector.broadcast %3 : vector<1x128xf32> to vector<32x128xf32>
    %5 = arith.subf %0, %4 : vector<32x128xf32>
    %6 = math.exp %5 : vector<32x128xf32>
    %cst_3 = arith.constant dense<0.000000e+00> : vector<128xf32>
    %7 = vector.multi_reduction <add>, %6, %cst_3 [0] : vector<32x128xf32> to vector<128xf32>
    %8 = vector.shape_cast %7 : vector<128xf32> to vector<1x128xf32>
    %9 = math.log %8 : vector<1x128xf32>
    %10 = arith.addf %9, %3 : vector<1x128xf32>
    %11 = tpu.iota {dimensions = array<i32: 0>} : vector<32x128xi32>
    %12 = vector.broadcast %1 : vector<1x128xi32> to vector<32x128xi32>
    %13 = arith.cmpi eq, %11, %12 : vector<32x128xi32>
    %cst_4 = arith.constant 0.000000e+00 : f32
    %14 = vector.broadcast %cst_4 : f32 to vector<32x128xf32>
    %15 = arith.select %13, %0, %14 : vector<32x128xi1>, vector<32x128xf32>
    %cst_5 = arith.constant dense<0.000000e+00> : vector<128xf32>
    %16 = vector.multi_reduction <add>, %15, %cst_5 [0] : vector<32x128xf32> to vector<128xf32>
    %17 = vector.shape_cast %16 : vector<128xf32> to vector<1x128xf32>
    %c-1_i32 = arith.constant -1 : i32
    %18 = vector.broadcast %c-1_i32 : i32 to vector<1x128xi32>
    %19 = arith.cmpi ne, %1, %18 : vector<1x128xi32>
    %20 = arith.subf %10, %17 : vector<1x128xf32>
    %cst_6 = arith.constant 0.000000e+00 : f32
    %21 = vector.broadcast %cst_6 : f32 to vector<1x128xf32>
    %22 = arith.maximumf %20, %21 : vector<1x128xf32>
    %cst_7 = arith.constant 0.000000e+00 : f32
    %23 = vector.broadcast %cst_7 : f32 to vector<1x128xf32>
    %24 = arith.select %19, %22, %23 : vector<1x128xi1>, vector<1x128xf32>
    %25 = arith.index_cast %arg0 : i32 to index
    %c0_8 = arith.constant 0 : index
    %c0_9 = arith.constant 0 : index
    %26 = vector.load %arg4[%25, %c0_8, %c0_9] : memref<1x1x128xf32, #tpu.memory_space<vmem>>, vector<1x1x128xf32>
    %27 = vector.shape_cast %26 : vector<1x1x128xf32> to vector<1x128xf32>
    %28 = vector.shape_cast %24 : vector<1x128xf32> to vector<1x1x128xf32>
    tpu.vector_store %arg4[%25, %c0_8, %c0_9], %28 {strides = array<i32>} : memref<1x1x128xf32, #tpu.memory_space<vmem>>, vector<1x1x128xf32>,
    %c0_i32 = arith.constant 0 : i32
    %29 = arith.cmpi eq, %arg0, %c0_i32 : i32
    %30 = arith.extui %29 : i1 to i32
    %c0_i32_10 = arith.constant 0 : i32
    %31 = arith.cmpi ne, %30, %c0_i32_10 : i32
    scf.if %31 {
      %c0_11 = arith.constant 0 : index
      %c0_12 = arith.constant 0 : index
      %c0_13 = arith.constant 0 : index
      %32 = vector.load %arg4[%c0_11, %c0_12, %c0_13] : memref<1x1x128xf32, #tpu.memory_space<vmem>>, vector<1x1x128xf32>
      %33 = tpu.bitcast %32 : vector<1x1x128xf32> -> vector<1x1x128xi32>
      %c0_i32_14 = arith.constant 0 : i32
      %c1073741824_i32 = arith.constant 1073741824 : i32
      %34 = arith.ori %c0_i32_14, %c1073741824_i32 : i32
      %35 = vector.broadcast %34 : i32 to vector<1x1x128xi32>
      %36 = arith.cmpi sge, %33, %35 : vector<1x1x128xi32>
      %37 = arith.extui %36 : vector<1x1x128xi1> to vector<1x1x128xi32>
      %38 = vector.shape_cast %37 : vector<1x1x128xi32> to vector<1x1x1x128xi32>
      %cst_15 = arith.constant dense<0> : vector<1xi32>
      %39 = vector.multi_reduction <add>, %38, %cst_15 [1, 2, 3] : vector<1x1x1x128xi32> to vector<1xi32>
      %40 = vector.shape_cast %39 : vector<1xi32> to vector<1x1x1x1xi32>
      %41 = vector.extract %40[0, 0, 0, 0] : i32 from vector<1x1x1x1xi32>
      %c6_i32 = arith.constant 6 : i32
      %42 = arith.cmpi sge, %41, %c6_i32 : i32
      %c0_i32_16 = arith.constant 0 : i32
      %43 = arith.select %42, %34, %c0_i32_16 : i32
      %c536870912_i32 = arith.constant 536870912 : i32
      %44 = arith.ori %43, %c536870912_i32 : i32
      %45 = vector.broadcast %44 : i32 to vector<1x1x128xi32>
      %46 = arith.cmpi sge, %33, %45 : vector<1x1x128xi32>
      %47 = arith.extui %46 : vector<1x1x128xi1> to vector<1x1x128xi32>
      %48 = vector.shape_cast %47 : vector<1x1x128xi32> to vector<1x1x1x128xi32>
      %cst_17 = arith.constant dense<0> : vector<1xi32>
      %49 = vector.multi_reduction <add>, %48, %cst_17 [1, 2, 3] : vector<1x1x1x128xi32> to vector<1xi32>
      %50 = vector.shape_cast %49 : vector<1xi32> to vector<1x1x1x1xi32>
      %51 = vector.extract %50[0, 0, 0, 0] : i32 from vector<1x1x1x1xi32>
      %c6_i32_18 = arith.constant 6 : i32
      %52 = arith.cmpi sge, %51, %c6_i32_18 : i32
      %53 = arith.select %52, %44, %43 : i32
      %c268435456_i32 = arith.constant 268435456 : i32
      %54 = arith.ori %53, %c268435456_i32 : i32
      %55 = vector.broadcast %54 : i32 to vector<1x1x128xi32>
      %56 = arith.cmpi sge, %33, %55 : vector<1x1x128xi32>
      %57 = arith.extui %56 : vector<1x1x128xi1> to vector<1x1x128xi32>
      %58 = vector.shape_cast %57 : vector<1x1x128xi32> to vector<1x1x1x128xi32>
      %cst_19 = arith.constant dense<0> : vector<1xi32>
      %59 = vector.multi_reduction <add>, %58, %cst_19 [1, 2, 3] : vector<1x1x1x128xi32> to vector<1xi32>
      %60 = vector.shape_cast %59 : vector<1xi32> to vector<1x1x1x1xi32>
      %61 = vector.extract %60[0, 0, 0, 0] : i32 from vector<1x1x1x1xi32>
      %c6_i32_20 = arith.constant 6 : i32
      %62 = arith.cmpi sge, %61, %c6_i32_20 : i32
      %63 = arith.select %62, %54, %53 : i32
      %c134217728_i32 = arith.constant 134217728 : i32
      %64 = arith.ori %63, %c134217728_i32 : i32
      %65 = vector.broadcast %64 : i32 to vector<1x1x128xi32>
      %66 = arith.cmpi sge, %33, %65 : vector<1x1x128xi32>
      %67 = arith.extui %66 : vector<1x1x128xi1> to vector<1x1x128xi32>
      %68 = vector.shape_cast %67 : vector<1x1x128xi32> to vector<1x1x1x128xi32>
      %cst_21 = arith.constant dense<0> : vector<1xi32>
      %69 = vector.multi_reduction <add>, %68, %cst_21 [1, 2, 3] : vector<1x1x1x128xi32> to vector<1xi32>
      %70 = vector.shape_cast %69 : vector<1xi32> to vector<1x1x1x1xi32>
      %71 = vector.extract %70[0, 0, 0, 0] : i32 from vector<1x1x1x1xi32>
      %c6_i32_22 = arith.constant 6 : i32
      %72 = arith.cmpi sge, %71, %c6_i32_22 : i32
      %73 = arith.select %72, %64, %63 : i32
      %c67108864_i32 = arith.constant 67108864 : i32
      %74 = arith.ori %73, %c67108864_i32 : i32
      %75 = vector.broadcast %74 : i32 to vector<1x1x128xi32>
      %76 = arith.cmpi sge, %33, %75 : vector<1x1x128xi32>
      %77 = arith.extui %76 : vector<1x1x128xi1> to vector<1x1x128xi32>
      %78 = vector.shape_cast %77 : vector<1x1x128xi32> to vector<1x1x1x128xi32>
      %cst_23 = arith.constant dense<0> : vector<1xi32>
      %79 = vector.multi_reduction <add>, %78, %cst_23 [1, 2, 3] : vector<1x1x1x128xi32> to vector<1xi32>
      %80 = vector.shape_cast %79 : vector<1xi32> to vector<1x1x1x1xi32>
      %81 = vector.extract %80[0, 0, 0, 0] : i32 from vector<1x1x1x1xi32>
      %c6_i32_24 = arith.constant 6 : i32
      %82 = arith.cmpi sge, %81, %c6_i32_24 : i32
      %83 = arith.select %82, %74, %73 : i32
      %c33554432_i32 = arith.constant 33554432 : i32
      %84 = arith.ori %83, %c33554432_i32 : i32
      %85 = vector.broadcast %84 : i32 to vector<1x1x128xi32>
      %86 = arith.cmpi sge, %33, %85 : vector<1x1x128xi32>
      %87 = arith.extui %86 : vector<1x1x128xi1> to vector<1x1x128xi32>
      %88 = vector.shape_cast %87 : vector<1x1x128xi32> to vector<1x1x1x128xi32>
      %cst_25 = arith.constant dense<0> : vector<1xi32>
      %89 = vector.multi_reduction <add>, %88, %cst_25 [1, 2, 3] : vector<1x1x1x128xi32> to vector<1xi32>
      %90 = vector.shape_cast %89 : vector<1xi32> to vector<1x1x1x1xi32>
      %91 = vector.extract %90[0, 0, 0, 0] : i32 from vector<1x1x1x1xi32>
      %c6_i32_26 = arith.constant 6 : i32
      %92 = arith.cmpi sge, %91, %c6_i32_26 : i32
      %93 = arith.select %92, %84, %83 : i32
      %c16777216_i32 = arith.constant 16777216 : i32
      %94 = arith.ori %93, %c16777216_i32 : i32
      %95 = vector.broadcast %94 : i32 to vector<1x1x128xi32>
      %96 = arith.cmpi sge, %33, %95 : vector<1x1x128xi32>
      %97 = arith.extui %96 : vector<1x1x128xi1> to vector<1x1x128xi32>
      %98 = vector.shape_cast %97 : vector<1x1x128xi32> to vector<1x1x1x128xi32>
      %cst_27 = arith.constant dense<0> : vector<1xi32>
      %99 = vector.multi_reduction <add>, %98, %cst_27 [1, 2, 3] : vector<1x1x1x128xi32> to vector<1xi32>
      %100 = vector.shape_cast %99 : vector<1xi32> to vector<1x1x1x1xi32>
      %101 = vector.extract %100[0, 0, 0, 0] : i32 from vector<1x1x1x1xi32>
      %c6_i32_28 = arith.constant 6 : i32
      %102 = arith.cmpi sge, %101, %c6_i32_28 : i32
      %103 = arith.select %102, %94, %93 : i32
      %c8388608_i32 = arith.constant 8388608 : i32
      %104 = arith.ori %103, %c8388608_i32 : i32
      %105 = vector.broadcast %104 : i32 to vector<1x1x128xi32>
      %106 = arith.cmpi sge, %33, %105 : vector<1x1x128xi32>
      %107 = arith.extui %106 : vector<1x1x128xi1> to vector<1x1x128xi32>
      %108 = vector.shape_cast %107 : vector<1x1x128xi32> to vector<1x1x1x128xi32>
      %cst_29 = arith.constant dense<0> : vector<1xi32>
      %109 = vector.multi_reduction <add>, %108, %cst_29 [1, 2, 3] : vector<1x1x1x128xi32> to vector<1xi32>
      %110 = vector.shape_cast %109 : vector<1xi32> to vector<1x1x1x1xi32>
      %111 = vector.extract %110[0, 0, 0, 0] : i32 from vector<1x1x1x1xi32>
      %c6_i32_30 = arith.constant 6 : i32
      %112 = arith.cmpi sge, %111, %c6_i32_30 : i32
      %113 = arith.select %112, %104, %103 : i32
      %c4194304_i32 = arith.constant 4194304 : i32
      %114 = arith.ori %113, %c4194304_i32 : i32
      %115 = vector.broadcast %114 : i32 to vector<1x1x128xi32>
      %116 = arith.cmpi sge, %33, %115 : vector<1x1x128xi32>
      %117 = arith.extui %116 : vector<1x1x128xi1> to vector<1x1x128xi32>
      %118 = vector.shape_cast %117 : vector<1x1x128xi32> to vector<1x1x1x128xi32>
      %cst_31 = arith.constant dense<0> : vector<1xi32>
      %119 = vector.multi_reduction <add>, %118, %cst_31 [1, 2, 3] : vector<1x1x1x128xi32> to vector<1xi32>
      %120 = vector.shape_cast %119 : vector<1xi32> to vector<1x1x1x1xi32>
      %121 = vector.extract %120[0, 0, 0, 0] : i32 from vector<1x1x1x1xi32>
      %c6_i32_32 = arith.constant 6 : i32
      %122 = arith.cmpi sge, %121, %c6_i32_32 : i32
      %123 = arith.select %122, %114, %113 : i32
      %c2097152_i32 = arith.constant 2097152 : i32
      %124 = arith.ori %123, %c2097152_i32 : i32
      %125 = vector.broadcast %124 : i32 to vector<1x1x128xi32>
      %126 = arith.cmpi sge, %33, %125 : vector<1x1x128xi32>
      %127 = arith.extui %126 : vector<1x1x128xi1> to vector<1x1x128xi32>
      %128 = vector.shape_cast %127 : vector<1x1x128xi32> to vector<1x1x1x128xi32>
      %cst_33 = arith.constant dense<0> : vector<1xi32>
      %129 = vector.multi_reduction <add>, %128, %cst_33 [1, 2, 3] : vector<1x1x1x128xi32> to vector<1xi32>
      %130 = vector.shape_cast %129 : vector<1xi32> to vector<1x1x1x1xi32>
      %131 = vector.extract %130[0, 0, 0, 0] : i32 from vector<1x1x1x1xi32>
      %c6_i32_34 = arith.constant 6 : i32
      %132 = arith.cmpi sge, %131, %c6_i32_34 : i32
      %133 = arith.select %132, %124, %123 : i32
      %c1048576_i32 = arith.constant 1048576 : i32
      %134 = arith.ori %133, %c1048576_i32 : i32
      %135 = vector.broadcast %134 : i32 to vector<1x1x128xi32>
      %136 = arith.cmpi sge, %33, %135 : vector<1x1x128xi32>
      %137 = arith.extui %136 : vector<1x1x128xi1> to vector<1x1x128xi32>
      %138 = vector.shape_cast %137 : vector<1x1x128xi32> to vector<1x1x1x128xi32>
      %cst_35 = arith.constant dense<0> : vector<1xi32>
      %139 = vector.multi_reduction <add>, %138, %cst_35 [1, 2, 3] : vector<1x1x1x128xi32> to vector<1xi32>
      %140 = vector.shape_cast %139 : vector<1xi32> to vector<1x1x1x1xi32>
      %141 = vector.extract %140[0, 0, 0, 0] : i32 from vector<1x1x1x1xi32>
      %c6_i32_36 = arith.constant 6 : i32
      %142 = arith.cmpi sge, %141, %c6_i32_36 : i32
      %143 = arith.select %142, %134, %133 : i32
      %c524288_i32 = arith.constant 524288 : i32
      %144 = arith.ori %143, %c524288_i32 : i32
      %145 = vector.broadcast %144 : i32 to vector<1x1x128xi32>
      %146 = arith.cmpi sge, %33, %145 : vector<1x1x128xi32>
      %147 = arith.extui %146 : vector<1x1x128xi1> to vector<1x1x128xi32>
      %148 = vector.shape_cast %147 : vector<1x1x128xi32> to vector<1x1x1x128xi32>
      %cst_37 = arith.constant dense<0> : vector<1xi32>
      %149 = vector.multi_reduction <add>, %148, %cst_37 [1, 2, 3] : vector<1x1x1x128xi32> to vector<1xi32>
      %150 = vector.shape_cast %149 : vector<1xi32> to vector<1x1x1x1xi32>
      %151 = vector.extract %150[0, 0, 0, 0] : i32 from vector<1x1x1x1xi32>
      %c6_i32_38 = arith.constant 6 : i32
      %152 = arith.cmpi sge, %151, %c6_i32_38 : i32
      %153 = arith.select %152, %144, %143 : i32
      %c262144_i32 = arith.constant 262144 : i32
      %154 = arith.ori %153, %c262144_i32 : i32
      %155 = vector.broadcast %154 : i32 to vector<1x1x128xi32>
      %156 = arith.cmpi sge, %33, %155 : vector<1x1x128xi32>
      %157 = arith.extui %156 : vector<1x1x128xi1> to vector<1x1x128xi32>
      %158 = vector.shape_cast %157 : vector<1x1x128xi32> to vector<1x1x1x128xi32>
      %cst_39 = arith.constant dense<0> : vector<1xi32>
      %159 = vector.multi_reduction <add>, %158, %cst_39 [1, 2, 3] : vector<1x1x1x128xi32> to vector<1xi32>
      %160 = vector.shape_cast %159 : vector<1xi32> to vector<1x1x1x1xi32>
      %161 = vector.extract %160[0, 0, 0, 0] : i32 from vector<1x1x1x1xi32>
      %c6_i32_40 = arith.constant 6 : i32
      %162 = arith.cmpi sge, %161, %c6_i32_40 : i32
      %163 = arith.select %162, %154, %153 : i32
      %c131072_i32 = arith.constant 131072 : i32
      %164 = arith.ori %163, %c131072_i32 : i32
      %165 = vector.broadcast %164 : i32 to vector<1x1x128xi32>
      %166 = arith.cmpi sge, %33, %165 : vector<1x1x128xi32>
      %167 = arith.extui %166 : vector<1x1x128xi1> to vector<1x1x128xi32>
      %168 = vector.shape_cast %167 : vector<1x1x128xi32> to vector<1x1x1x128xi32>
      %cst_41 = arith.constant dense<0> : vector<1xi32>
      %169 = vector.multi_reduction <add>, %168, %cst_41 [1, 2, 3] : vector<1x1x1x128xi32> to vector<1xi32>
      %170 = vector.shape_cast %169 : vector<1xi32> to vector<1x1x1x1xi32>
      %171 = vector.extract %170[0, 0, 0, 0] : i32 from vector<1x1x1x1xi32>
      %c6_i32_42 = arith.constant 6 : i32
      %172 = arith.cmpi sge, %171, %c6_i32_42 : i32
      %173 = arith.select %172, %164, %163 : i32
      %c65536_i32 = arith.constant 65536 : i32
      %174 = arith.ori %173, %c65536_i32 : i32
      %175 = vector.broadcast %174 : i32 to vector<1x1x128xi32>
      %176 = arith.cmpi sge, %33, %175 : vector<1x1x128xi32>
      %177 = arith.extui %176 : vector<1x1x128xi1> to vector<1x1x128xi32>
      %178 = vector.shape_cast %177 : vector<1x1x128xi32> to vector<1x1x1x128xi32>
      %cst_43 = arith.constant dense<0> : vector<1xi32>
      %179 = vector.multi_reduction <add>, %178, %cst_43 [1, 2, 3] : vector<1x1x1x128xi32> to vector<1xi32>
      %180 = vector.shape_cast %179 : vector<1xi32> to vector<1x1x1x1xi32>
      %181 = vector.extract %180[0, 0, 0, 0] : i32 from vector<1x1x1x1xi32>
      %c6_i32_44 = arith.constant 6 : i32
      %182 = arith.cmpi sge, %181, %c6_i32_44 : i32
      %183 = arith.select %182, %174, %173 : i32
      %c32768_i32 = arith.constant 32768 : i32
      %184 = arith.ori %183, %c32768_i32 : i32
      %185 = vector.broadcast %184 : i32 to vector<1x1x128xi32>
      %186 = arith.cmpi sge, %33, %185 : vector<1x1x128xi32>
      %187 = arith.extui %186 : vector<1x1x128xi1> to vector<1x1x128xi32>
      %188 = vector.shape_cast %187 : vector<1x1x128xi32> to vector<1x1x1x128xi32>
      %cst_45 = arith.constant dense<0> : vector<1xi32>
      %189 = vector.multi_reduction <add>, %188, %cst_45 [1, 2, 3] : vector<1x1x1x128xi32> to vector<1xi32>
      %190 = vector.shape_cast %189 : vector<1xi32> to vector<1x1x1x1xi32>
      %191 = vector.extract %190[0, 0, 0, 0] : i32 from vector<1x1x1x1xi32>
      %c6_i32_46 = arith.constant 6 : i32
      %192 = arith.cmpi sge, %191, %c6_i32_46 : i32
      %193 = arith.select %192, %184, %183 : i32
      %c16384_i32 = arith.constant 16384 : i32
      %194 = arith.ori %193, %c16384_i32 : i32
      %195 = vector.broadcast %194 : i32 to vector<1x1x128xi32>
      %196 = arith.cmpi sge, %33, %195 : vector<1x1x128xi32>
      %197 = arith.extui %196 : vector<1x1x128xi1> to vector<1x1x128xi32>
      %198 = vector.shape_cast %197 : vector<1x1x128xi32> to vector<1x1x1x128xi32>
      %cst_47 = arith.constant dense<0> : vector<1xi32>
      %199 = vector.multi_reduction <add>, %198, %cst_47 [1, 2, 3] : vector<1x1x1x128xi32> to vector<1xi32>
      %200 = vector.shape_cast %199 : vector<1xi32> to vector<1x1x1x1xi32>
      %201 = vector.extract %200[0, 0, 0, 0] : i32 from vector<1x1x1x1xi32>
      %c6_i32_48 = arith.constant 6 : i32
      %202 = arith.cmpi sge, %201, %c6_i32_48 : i32
      %203 = arith.select %202, %194, %193 : i32
      %c8192_i32 = arith.constant 8192 : i32
      %204 = arith.ori %203, %c8192_i32 : i32
      %205 = vector.broadcast %204 : i32 to vector<1x1x128xi32>
      %206 = arith.cmpi sge, %33, %205 : vector<1x1x128xi32>
      %207 = arith.extui %206 : vector<1x1x128xi1> to vector<1x1x128xi32>
      %208 = vector.shape_cast %207 : vector<1x1x128xi32> to vector<1x1x1x128xi32>
      %cst_49 = arith.constant dense<0> : vector<1xi32>
      %209 = vector.multi_reduction <add>, %208, %cst_49 [1, 2, 3] : vector<1x1x1x128xi32> to vector<1xi32>
      %210 = vector.shape_cast %209 : vector<1xi32> to vector<1x1x1x1xi32>
      %211 = vector.extract %210[0, 0, 0, 0] : i32 from vector<1x1x1x1xi32>
      %c6_i32_50 = arith.constant 6 : i32
      %212 = arith.cmpi sge, %211, %c6_i32_50 : i32
      %213 = arith.select %212, %204, %203 : i32
      %c4096_i32 = arith.constant 4096 : i32
      %214 = arith.ori %213, %c4096_i32 : i32
      %215 = vector.broadcast %214 : i32 to vector<1x1x128xi32>
      %216 = arith.cmpi sge, %33, %215 : vector<1x1x128xi32>
      %217 = arith.extui %216 : vector<1x1x128xi1> to vector<1x1x128xi32>
      %218 = vector.shape_cast %217 : vector<1x1x128xi32> to vector<1x1x1x128xi32>
      %cst_51 = arith.constant dense<0> : vector<1xi32>
      %219 = vector.multi_reduction <add>, %218, %cst_51 [1, 2, 3] : vector<1x1x1x128xi32> to vector<1xi32>
      %220 = vector.shape_cast %219 : vector<1xi32> to vector<1x1x1x1xi32>
      %221 = vector.extract %220[0, 0, 0, 0] : i32 from vector<1x1x1x1xi32>
      %c6_i32_52 = arith.constant 6 : i32
      %222 = arith.cmpi sge, %221, %c6_i32_52 : i32
      %223 = arith.select %222, %214, %213 : i32
      %c2048_i32 = arith.constant 2048 : i32
      %224 = arith.ori %223, %c2048_i32 : i32
      %225 = vector.broadcast %224 : i32 to vector<1x1x128xi32>
      %226 = arith.cmpi sge, %33, %225 : vector<1x1x128xi32>
      %227 = arith.extui %226 : vector<1x1x128xi1> to vector<1x1x128xi32>
      %228 = vector.shape_cast %227 : vector<1x1x128xi32> to vector<1x1x1x128xi32>
      %cst_53 = arith.constant dense<0> : vector<1xi32>
      %229 = vector.multi_reduction <add>, %228, %cst_53 [1, 2, 3] : vector<1x1x1x128xi32> to vector<1xi32>
      %230 = vector.shape_cast %229 : vector<1xi32> to vector<1x1x1x1xi32>
      %231 = vector.extract %230[0, 0, 0, 0] : i32 from vector<1x1x1x1xi32>
      %c6_i32_54 = arith.constant 6 : i32
      %232 = arith.cmpi sge, %231, %c6_i32_54 : i32
      %233 = arith.select %232, %224, %223 : i32
      %c1024_i32 = arith.constant 1024 : i32
      %234 = arith.ori %233, %c1024_i32 : i32
      %235 = vector.broadcast %234 : i32 to vector<1x1x128xi32>
      %236 = arith.cmpi sge, %33, %235 : vector<1x1x128xi32>
      %237 = arith.extui %236 : vector<1x1x128xi1> to vector<1x1x128xi32>
      %238 = vector.shape_cast %237 : vector<1x1x128xi32> to vector<1x1x1x128xi32>
      %cst_55 = arith.constant dense<0> : vector<1xi32>
      %239 = vector.multi_reduction <add>, %238, %cst_55 [1, 2, 3] : vector<1x1x1x128xi32> to vector<1xi32>
      %240 = vector.shape_cast %239 : vector<1xi32> to vector<1x1x1x1xi32>
      %241 = vector.extract %240[0, 0, 0, 0] : i32 from vector<1x1x1x1xi32>
      %c6_i32_56 = arith.constant 6 : i32
      %242 = arith.cmpi sge, %241, %c6_i32_56 : i32
      %243 = arith.select %242, %234, %233 : i32
      %c512_i32 = arith.constant 512 : i32
      %244 = arith.ori %243, %c512_i32 : i32
      %245 = vector.broadcast %244 : i32 to vector<1x1x128xi32>
      %246 = arith.cmpi sge, %33, %245 : vector<1x1x128xi32>
      %247 = arith.extui %246 : vector<1x1x128xi1> to vector<1x1x128xi32>
      %248 = vector.shape_cast %247 : vector<1x1x128xi32> to vector<1x1x1x128xi32>
      %cst_57 = arith.constant dense<0> : vector<1xi32>
      %249 = vector.multi_reduction <add>, %248, %cst_57 [1, 2, 3] : vector<1x1x1x128xi32> to vector<1xi32>
      %250 = vector.shape_cast %249 : vector<1xi32> to vector<1x1x1x1xi32>
      %251 = vector.extract %250[0, 0, 0, 0] : i32 from vector<1x1x1x1xi32>
      %c6_i32_58 = arith.constant 6 : i32
      %252 = arith.cmpi sge, %251, %c6_i32_58 : i32
      %253 = arith.select %252, %244, %243 : i32
      %c256_i32 = arith.constant 256 : i32
      %254 = arith.ori %253, %c256_i32 : i32
      %255 = vector.broadcast %254 : i32 to vector<1x1x128xi32>
      %256 = arith.cmpi sge, %33, %255 : vector<1x1x128xi32>
      %257 = arith.extui %256 : vector<1x1x128xi1> to vector<1x1x128xi32>
      %258 = vector.shape_cast %257 : vector<1x1x128xi32> to vector<1x1x1x128xi32>
      %cst_59 = arith.constant dense<0> : vector<1xi32>
      %259 = vector.multi_reduction <add>, %258, %cst_59 [1, 2, 3] : vector<1x1x1x128xi32> to vector<1xi32>
      %260 = vector.shape_cast %259 : vector<1xi32> to vector<1x1x1x1xi32>
      %261 = vector.extract %260[0, 0, 0, 0] : i32 from vector<1x1x1x1xi32>
      %c6_i32_60 = arith.constant 6 : i32
      %262 = arith.cmpi sge, %261, %c6_i32_60 : i32
      %263 = arith.select %262, %254, %253 : i32
      %c128_i32 = arith.constant 128 : i32
      %264 = arith.ori %263, %c128_i32 : i32
      %265 = vector.broadcast %264 : i32 to vector<1x1x128xi32>
      %266 = arith.cmpi sge, %33, %265 : vector<1x1x128xi32>
      %267 = arith.extui %266 : vector<1x1x128xi1> to vector<1x1x128xi32>
      %268 = vector.shape_cast %267 : vector<1x1x128xi32> to vector<1x1x1x128xi32>
      %cst_61 = arith.constant dense<0> : vector<1xi32>
      %269 = vector.multi_reduction <add>, %268, %cst_61 [1, 2, 3] : vector<1x1x1x128xi32> to vector<1xi32>
      %270 = vector.shape_cast %269 : vector<1xi32> to vector<1x1x1x1xi32>
      %271 = vector.extract %270[0, 0, 0, 0] : i32 from vector<1x1x1x1xi32>
      %c6_i32_62 = arith.constant 6 : i32
      %272 = arith.cmpi sge, %271, %c6_i32_62 : i32
      %273 = arith.select %272, %264, %263 : i32
      %c64_i32 = arith.constant 64 : i32
      %274 = arith.ori %273, %c64_i32 : i32
      %275 = vector.broadcast %274 : i32 to vector<1x1x128xi32>
      %276 = arith.cmpi sge, %33, %275 : vector<1x1x128xi32>
      %277 = arith.extui %276 : vector<1x1x128xi1> to vector<1x1x128xi32>
      %278 = vector.shape_cast %277 : vector<1x1x128xi32> to vector<1x1x1x128xi32>
      %cst_63 = arith.constant dense<0> : vector<1xi32>
      %279 = vector.multi_reduction <add>, %278, %cst_63 [1, 2, 3] : vector<1x1x1x128xi32> to vector<1xi32>
      %280 = vector.shape_cast %279 : vector<1xi32> to vector<1x1x1x1xi32>
      %281 = vector.extract %280[0, 0, 0, 0] : i32 from vector<1x1x1x1xi32>
      %c6_i32_64 = arith.constant 6 : i32
      %282 = arith.cmpi sge, %281, %c6_i32_64 : i32
      %283 = arith.select %282, %274, %273 : i32
      %c32_i32 = arith.constant 32 : i32
      %284 = arith.ori %283, %c32_i32 : i32
      %285 = vector.broadcast %284 : i32 to vector<1x1x128xi32>
      %286 = arith.cmpi sge, %33, %285 : vector<1x1x128xi32>
      %287 = arith.extui %286 : vector<1x1x128xi1> to vector<1x1x128xi32>
      %288 = vector.shape_cast %287 : vector<1x1x128xi32> to vector<1x1x1x128xi32>
      %cst_65 = arith.constant dense<0> : vector<1xi32>
      %289 = vector.multi_reduction <add>, %288, %cst_65 [1, 2, 3] : vector<1x1x1x128xi32> to vector<1xi32>
      %290 = vector.shape_cast %289 : vector<1xi32> to vector<1x1x1x1xi32>
      %291 = vector.extract %290[0, 0, 0, 0] : i32 from vector<1x1x1x1xi32>
      %c6_i32_66 = arith.constant 6 : i32
      %292 = arith.cmpi sge, %291, %c6_i32_66 : i32
      %293 = arith.select %292, %284, %283 : i32
      %c16_i32 = arith.constant 16 : i32
      %294 = arith.ori %293, %c16_i32 : i32
      %295 = vector.broadcast %294 : i32 to vector<1x1x128xi32>
      %296 = arith.cmpi sge, %33, %295 : vector<1x1x128xi32>
      %297 = arith.extui %296 : vector<1x1x128xi1> to vector<1x1x128xi32>
      %298 = vector.shape_cast %297 : vector<1x1x128xi32> to vector<1x1x1x128xi32>
      %cst_67 = arith.constant dense<0> : vector<1xi32>
      %299 = vector.multi_reduction <add>, %298, %cst_67 [1, 2, 3] : vector<1x1x1x128xi32> to vector<1xi32>
      %300 = vector.shape_cast %299 : vector<1xi32> to vector<1x1x1x1xi32>
      %301 = vector.extract %300[0, 0, 0, 0] : i32 from vector<1x1x1x1xi32>
      %c6_i32_68 = arith.constant 6 : i32
      %302 = arith.cmpi sge, %301, %c6_i32_68 : i32
      %303 = arith.select %302, %294, %293 : i32
      %c8_i32 = arith.constant 8 : i32
      %304 = arith.ori %303, %c8_i32 : i32
      %305 = vector.broadcast %304 : i32 to vector<1x1x128xi32>
      %306 = arith.cmpi sge, %33, %305 : vector<1x1x128xi32>
      %307 = arith.extui %306 : vector<1x1x128xi1> to vector<1x1x128xi32>
      %308 = vector.shape_cast %307 : vector<1x1x128xi32> to vector<1x1x1x128xi32>
      %cst_69 = arith.constant dense<0> : vector<1xi32>
      %309 = vector.multi_reduction <add>, %308, %cst_69 [1, 2, 3] : vector<1x1x1x128xi32> to vector<1xi32>
      %310 = vector.shape_cast %309 : vector<1xi32> to vector<1x1x1x1xi32>
      %311 = vector.extract %310[0, 0, 0, 0] : i32 from vector<1x1x1x1xi32>
      %c6_i32_70 = arith.constant 6 : i32
      %312 = arith.cmpi sge, %311, %c6_i32_70 : i32
      %313 = arith.select %312, %304, %303 : i32
      %c4_i32 = arith.constant 4 : i32
      %314 = arith.ori %313, %c4_i32 : i32
      %315 = vector.broadcast %314 : i32 to vector<1x1x128xi32>
      %316 = arith.cmpi sge, %33, %315 : vector<1x1x128xi32>
      %317 = arith.extui %316 : vector<1x1x128xi1> to vector<1x1x128xi32>
      %318 = vector.shape_cast %317 : vector<1x1x128xi32> to vector<1x1x1x128xi32>
      %cst_71 = arith.constant dense<0> : vector<1xi32>
      %319 = vector.multi_reduction <add>, %318, %cst_71 [1, 2, 3] : vector<1x1x1x128xi32> to vector<1xi32>
      %320 = vector.shape_cast %319 : vector<1xi32> to vector<1x1x1x1xi32>
      %321 = vector.extract %320[0, 0, 0, 0] : i32 from vector<1x1x1x1xi32>
      %c6_i32_72 = arith.constant 6 : i32
      %322 = arith.cmpi sge, %321, %c6_i32_72 : i32
      %323 = arith.select %322, %314, %313 : i32
      %c2_i32 = arith.constant 2 : i32
      %324 = arith.ori %323, %c2_i32 : i32
      %325 = vector.broadcast %324 : i32 to vector<1x1x128xi32>
      %326 = arith.cmpi sge, %33, %325 : vector<1x1x128xi32>
      %327 = arith.extui %326 : vector<1x1x128xi1> to vector<1x1x128xi32>
      %328 = vector.shape_cast %327 : vector<1x1x128xi32> to vector<1x1x1x128xi32>
      %cst_73 = arith.constant dense<0> : vector<1xi32>
      %329 = vector.multi_reduction <add>, %328, %cst_73 [1, 2, 3] : vector<1x1x1x128xi32> to vector<1xi32>
      %330 = vector.shape_cast %329 : vector<1xi32> to vector<1x1x1x1xi32>
      %331 = vector.extract %330[0, 0, 0, 0] : i32 from vector<1x1x1x1xi32>
      %c6_i32_74 = arith.constant 6 : i32
      %332 = arith.cmpi sge, %331, %c6_i32_74 : i32
      %333 = arith.select %332, %324, %323 : i32
      %c1_i32 = arith.constant 1 : i32
      %334 = arith.ori %333, %c1_i32 : i32
      %335 = vector.broadcast %334 : i32 to vector<1x1x128xi32>
      %336 = arith.cmpi sge, %33, %335 : vector<1x1x128xi32>
      %337 = arith.extui %336 : vector<1x1x128xi1> to vector<1x1x128xi32>
      %338 = vector.shape_cast %337 : vector<1x1x128xi32> to vector<1x1x1x128xi32>
      %cst_75 = arith.constant dense<0> : vector<1xi32>
      %339 = vector.multi_reduction <add>, %338, %cst_75 [1, 2, 3] : vector<1x1x1x128xi32> to vector<1xi32>
      %340 = vector.shape_cast %339 : vector<1xi32> to vector<1x1x1x1xi32>
      %341 = vector.extract %340[0, 0, 0, 0] : i32 from vector<1x1x1x1xi32>
      %c6_i32_76 = arith.constant 6 : i32
      %342 = arith.cmpi sge, %341, %c6_i32_76 : i32
      %343 = arith.select %342, %334, %333 : i32
      %344 = vector.broadcast %343 : i32 to vector<1x1x128xi32>
      %345 = arith.cmpi sgt, %33, %344 : vector<1x1x128xi32>
      %cst_77 = arith.constant 0.000000e+00 : f32
      %346 = vector.broadcast %cst_77 : f32 to vector<1x1x128xf32>
      %347 = arith.select %345, %32, %346 : vector<1x1x128xi1>, vector<1x1x128xf32>
      %348 = vector.shape_cast %347 : vector<1x1x128xf32> to vector<1x1x1x128xf32>
      %cst_78 = arith.constant dense<0.000000e+00> : vector<1xf32>
      %349 = vector.multi_reduction <add>, %348, %cst_78 [1, 2, 3] : vector<1x1x1x128xf32> to vector<1xf32>
      %350 = vector.shape_cast %349 : vector<1xf32> to vector<1x1x1x1xf32>
      %351 = vector.extract %350[0, 0, 0, 0] : f32 from vector<1x1x1x1xf32>
      %352 = arith.extui %345 : vector<1x1x128xi1> to vector<1x1x128xi32>
      %353 = vector.shape_cast %352 : vector<1x1x128xi32> to vector<1x1x1x128xi32>
      %cst_79 = arith.constant dense<0> : vector<1xi32>
      %354 = vector.multi_reduction <add>, %353, %cst_79 [1, 2, 3] : vector<1x1x1x128xi32> to vector<1xi32>
      %355 = vector.shape_cast %354 : vector<1xi32> to vector<1x1x1x1xi32>
      %356 = vector.extract %355[0, 0, 0, 0] : i32 from vector<1x1x1x1xi32>
      %357 = arith.sitofp %356 : i32 to f32
      %358 = vector.broadcast %343 : i32 to vector<1x1x128xi32>
      %359 = arith.cmpi sle, %33, %358 : vector<1x1x128xi32>
      %cst_80 = arith.constant 0.000000e+00 : f32
      %360 = vector.broadcast %cst_80 : f32 to vector<1x1x128xf32>
      %361 = arith.select %359, %32, %360 : vector<1x1x128xi1>, vector<1x1x128xf32>
      %362 = vector.shape_cast %361 : vector<1x1x128xf32> to vector<1x1x1x128xf32>
      %cst_81 = arith.constant dense<0xFF800000> : vector<1xf32>
      %363 = vector.multi_reduction <maximumf>, %362, %cst_81 [1, 2, 3] : vector<1x1x1x128xf32> to vector<1xf32>
      %364 = vector.shape_cast %363 : vector<1xf32> to vector<1x1x1x1xf32>
      %365 = vector.extract %364[0, 0, 0, 0] : f32 from vector<1x1x1x1xf32>
      %cst_82 = arith.constant 6.000000e+00 : f32
      %366 = arith.subf %cst_82, %357 : f32
      %367 = arith.mulf %366, %365 : f32
      %368 = arith.addf %351, %367 : f32
      %cst_83 = arith.constant 0.166666672 : f32
      %369 = arith.mulf %368, %cst_83 : f32
      %c0_84 = arith.constant 0 : index
      %c0_85 = arith.constant 0 : index
      %370 = memref.load %arg3[%c0_84, %c0_85] : memref<1x1xf32, #tpu.memory_space<smem>>
      memref.store %369, %arg3[%c0_84, %c0_85] : memref<1x1xf32, #tpu.memory_space<smem>>
    } else {
    }
    return
  }
  func.func @transform_0(%arg0: i32) -> (i32, i32) {
    %c0_i32 = arith.constant 0 : i32
    %c0_i32_0 = arith.constant 0 : i32
    return %c0_i32, %arg0 : i32, i32
  }
  func.func @transform_1(%arg0: i32) -> (i32, i32) {
    %c0_i32 = arith.constant 0 : i32
    %c0_i32_0 = arith.constant 0 : i32
    return %c0_i32, %arg0 : i32, i32
  }
  func.func @transform_2(%arg0: i32) -> (i32, i32) {
    %c0_i32 = arith.constant 0 : i32
    %c0_i32_0 = arith.constant 0 : i32
    %c0_i32_1 = arith.constant 0 : i32
    return %c0_i32, %c0_i32_0 : i32, i32
  }
}

</mosaic_0001>

<bundles_post_ra>
// kernel: tpu_custom_call.1
= control target key start
LH: loop header
LB: loop body
LE: loop exit
PB: predicated region body
PF: predicated region fallthrough
CT: control target
= control target key end

     0   :  { %7 = vsyncpa [#allocation4], 0  ;;  %s1276_s0 = inlined_call_operand.hbm [shape: f32[32,128], index: 0, kind: input, shape index: {}]   ;;  %s1277_s1 = inlined_call_operand.hbm [shape: s32[1,128], index: 1, kind: input, shape index: {}]   ;;  %s1278_s2 = inlined_call_operand.hbm [shape: f32[1,1], index: 2, kind: output, shape index: {}]  }
   0x1   :  { %8 = vsyncpa [#allocation7], 0 }
   0x2   :  { %9 = vsyncpa [#allocation5], 0  ;;  %s14_s11 = sshll.u32 %s1276_s0, 4  ;;  %s1141_s12 = smov [#allocation3]   ;;  %s15_s11 = int_to_ptr.hbm [resolvable:$true] %s14_s11 }
   0x3   :  { %s16_s13 = sshll.u32 %s1141_s12, 4  ;;  %s28_s16 = sshll.u32 %s1277_s1, 4  ;;  %s17_s13 = int_to_ptr.vmem [resolvable:$true] %s16_s13  ;;  %s29_s16 = int_to_ptr.hbm [resolvable:$true] %s28_s16 }
   0x4   :  { %s1142_s17 = smov 128   ;;  %s1143_s18 = smov 8  }
   0x5   :  { %22 = dma.hbm_to_vmem [thread:$0]  %s15_s11, 512, %s17_s13, [#allocation4], %s1142_s17, %s1142_s17, %s1143_s18  }
   0x6   :  { %s1144_s19 = smov [#allocation6]  }
   0x7   :  { %s30_s20 = sshll.u32 %s1144_s19, 4  ;;  %s31_s20 = int_to_ptr.vmem [resolvable:$true] %s30_s20 }
   0x8   :  { %33 = dma.hbm_to_vmem [thread:$0]  %s29_s16, 16, %s31_s20, [#allocation7]  }
   0x9   :  { %1135 = dma.done.wait [#allocation4], 512  }
   0xa   :  { %1136 = vsyncadd [#allocation4], 4294966784 }
   0xb   :  { %1137 = dma.done.wait [#allocation7], 16  }
   0xc   :  { %1138 = vsyncadd [#allocation7], 4294967280  ;;  %v42_v0 = vld [vmem:[#allocation3] sm:$0xff]  ;;  %v43_v1 = vld [vmem:[#allocation3 + $0x8] sm:$0xff]  ;;  %v80_v7 = vlaneseq  ;;  %vm116_vm5 = vcmask 1040384   ;;  %v1145_v61 = vmov 0  }
   0xd   :  { %v44_v2 = vld [vmem:[#allocation3 + $0x10] sm:$0xff]  ;;  %v45_v3 = vld [vmem:[#allocation3 + $0x18] sm:$0xff]  ;;  %v47_v4 = vmax.f32 %v42_v0, %v43_v1  ;;  %v1063_v14 = vld [vmem:[#allocation6] ss:$0 sm:$0xff] }
   0xe   :  { %v48_v5 = vmax.f32 %v44_v2, %v45_v3  ;;  %v81_v10 = vshrl.u32 %v80_v7, 7  ;;  %v46_v55 = vld [vmem:[#allocation6] sm:$0x1] }
   0xf   :  { %vm103_vm4 = vcmp.ne.s32.totalorder %v46_v55, 4294967295 }
  0x10   :  { %v49_v6 = vmax.f32 %v47_v4, %v48_v5  ;;  %v82_v13 = vadd.s32 8, %v81_v10  ;;  %vm86_vm0 = vcmp.eq.s32.totalorder %v81_v10, %v1063_v14  ;;  %v83_v17 = vadd.s32 16, %v81_v10 }
  0x11   :  { %v90_v22 = vsel %vm86_vm0, %v42_v0, 0.0  ;;  %v84_v28 = vadd.s32 24, %v81_v10 }
  0x12   :  { %v50_v8 = vrot.slane %v49_v6, 4  ;;  %vm87_vm1 = vcmp.eq.s32.totalorder %v82_v13, %v1063_v14  ;;  %vm88_vm2 = vcmp.eq.s32.totalorder %v83_v17, %v1063_v14 }
  0x13   :  { %v91_v23 = vsel %vm87_vm1, %v43_v1, 0.0  ;;  %v92_v30 = vsel %vm88_vm2, %v44_v2, 0.0  ;;  %vm89_vm3 = vcmp.eq.s32.totalorder %v84_v28, %v1063_v14 }
  0x14   :  { %v51_v9 = vmax.f32 %v49_v6, %v50_v8  ;;  %v94_v29 = vadd.f32 %v91_v23, %v90_v22  ;;  %v93_v33 = vsel %vm89_vm3, %v45_v3, 0.0 }
  0x16   :  { %v52_v11 = vrot.slane %v51_v9, 2  ;;  %v95_v31 = vadd.f32 %v94_v29, %v92_v30 }
  0x18   :  { %v53_v12 = vmax.f32 %v51_v9, %v52_v11  ;;  %v96_v38 = vadd.f32 %v95_v31, %v93_v33 }
  0x1a   :  { %v54_v15 = vrot.slane %v53_v12, 1  ;;  %v97_v41 = vrot.slane %v96_v38, 4 }
  0x1c   :  { %v55_v16 = vmax.f32 %v53_v12, %v54_v15  ;;  %v98_v44 = vadd.f32 %v97_v41, %v96_v38 }
  0x1e   :  { %v56_v18 = vsub.f32 %v42_v0, %v55_v16  ;;  %v57_v19 = vsub.f32 %v43_v1, %v55_v16  ;;  %v58_v20 = vsub.f32 %v44_v2, %v55_v16  ;;  %v59_v21 = vsub.f32 %v45_v3, %v55_v16 }
  0x1f   :  { %v99_v47 = vrot.slane %v98_v44, 2 }
  0x20   :  { %v60_v24 = vmul.f32 1.442695, %v56_v18  ;;  %v62_v25 = vmul.f32 1.442695, %v57_v19  ;;  %v64_v26 = vmul.f32 1.442695, %v58_v20 }
  0x21   :  { %v66_v27 = vmul.f32 1.442695, %v59_v21  ;;  %v100_v50 = vadd.f32 %v99_v47, %v98_v44 }
  0x22   :  { %1064 = vpow2.f32 %v60_v24 }
  0x23   :  { %1066 = vpow2.f32 %v62_v25  ;;  %v101_v51 = vrot.slane %v100_v50, 1 }
  0x24   :  { %1068 = vpow2.f32 %v64_v26 }
  0x25   :  { %1070 = vpow2.f32 %v66_v27  ;;  %v102_v54 = vadd.f32 %v101_v51, %v100_v50 }
  0x28   :  { %v1065_v32 = vpop.eup %1064 }
  0x29   :  { %v1067_v34 = vpop.eup %1066 }
  0x2a   :  { %v1069_v35 = vpop.eup %1068  ;;  %v68_v36 = vadd.f32 %v1067_v34, %v1065_v32 }
  0x2b   :  { %v1071_v37 = vpop.eup %1070 }
  0x2c   :  { %v69_v39 = vadd.f32 %v1069_v35, %v68_v36 }
  0x2e   :  { %v70_v40 = vadd.f32 %v1071_v37, %v69_v39 }
  0x30   :  { %v71_v42 = vrot.slane %v70_v40, 4 }
  0x32   :  { %v72_v43 = vadd.f32 %v71_v42, %v70_v40 }
  0x34   :  { %v73_v45 = vrot.slane %v72_v43, 2 }
  0x36   :  { %v74_v46 = vadd.f32 %v73_v45, %v72_v43 }
  0x38   :  { %v75_v48 = vrot.slane %v74_v46, 1 }
  0x3a   :  { %v76_v49 = vadd.f32 %v75_v48, %v74_v46 }
  0x3c   :  { %1072 = vlog2.f32 %v76_v49 }
  0x42   :  { %v1073_v52 = vpop.eup %1072 }
  0x43   :  { %v78_v53 = vmul.f32 0.6931472, %v1073_v52 }
  0x45   :  { %v79_v56 = vadd.f32 %v78_v53, %v55_v16 }
  0x47   :  { %v104_v57 = vsub.f32 %v79_v56, %v102_v54 }
  0x49   :  { %v105_v58 = vmax.f32 %v104_v57, 0.0 }
  0x4b   :  { %v106_v59 = vsel %vm103_vm4, %v105_v58, 0.0 }
  0x4c   :  { %107 = vst [vmem:[#allocation2] sm:$0x1] %v106_v59 }
  0x53   :  { %v1168_v60 = vld [vmem:[#allocation2] sm:$0x1] }
  0x54   :  { %vm114_vm6 = vcmp.ge.s32.totalorder %v1168_v60, 1073741824 }
  0x55   :  { %v115_v62 = vsel %vm114_vm6, 1, %v1145_v61 }
  0x56   :  { %v117_v63 = vsel %vm116_vm5, %v115_v62, 0 }
  0x57   :  { %v119_v0 = vshrl.u32 %v117_v63, 16  ;;  %v118_v2 = vand.u32 65535, %v117_v63 }
  0x59   :  { %v121_v1 = vcvt.s32.f32 %v119_v0  ;;  %v120_v3 = vcvt.s32.f32 %v118_v2 }
  0x5b   :  { %124 = vadd.xlane.f32.xlu0 %v121_v1 }
  0x63   :  { %122 = vadd.xlane.f32.xlu0 %v120_v3 }
  0xce   :  { %v125_v4 = vpop.xlane.xlu0 %124 }
  0xcf   :  { %v127_v5 = vcvt.f32.s32 %v125_v4 }
  0xd1   :  { %v128_v7 = vshll.u32 %v127_v5, 16 }
  0xd6   :  { %v123_v6 = vpop.xlane.xlu0 %122 }
  0xd7   :  { %v126_v8 = vcvt.f32.s32 %v123_v6 }
  0xd9   :  { %v129_v9 = vadd.s32 %v128_v7, %v126_v8 }
  0xdb   :  { %v130_v10 = vrot.slane %v129_v9, 4 }
  0xdd   :  { %v131_v11 = vadd.s32 %v130_v10, %v129_v9 }
  0xdf   :  { %v132_v12 = vrot.slane %v131_v11, 2 }
  0xe1   :  { %v133_v13 = vadd.s32 %v132_v12, %v131_v11 }
  0xe3   :  { %v134_v14 = vrot.slane %v133_v13, 1 }
  0xe5   :  { %v135_v15 = vadd.s32 %v134_v14, %v133_v13 }
  0xe7   :  { %989 = vpush %v135_v15 }
 0x118   :  { %s990_s0 = spop %989 }
 0x119   :  { %p137_p0 = scmp.ge.s32.totalorder %s990_s0, 6 }
 0x11b   :  { %s138_s1 = scalar_select %p137_p0, 1073741824, 0 }
 0x11d   :  { %s139_s21 = sor.u32 536870912, %s138_s1 }
 0x11e   :  { %v140_v16 = vstv %s139_s21 }
 0x11f   :  { %vm141_vm7 = vcmp.ge.s32.totalorder %v1168_v60, %v140_v16 }
 0x120   :  { %v142_v17 = vsel %vm141_vm7, 1, %v1145_v61 }
 0x121   :  { %v143_v18 = vsel %vm116_vm5, %v142_v17, 0 }
 0x122   :  { %v145_v19 = vshrl.u32 %v143_v18, 16  ;;  %v144_v21 = vand.u32 65535, %v143_v18 }
 0x124   :  { %v147_v20 = vcvt.s32.f32 %v145_v19  ;;  %v146_v22 = vcvt.s32.f32 %v144_v21 }
 0x126   :  { %150 = vadd.xlane.f32.xlu1 %v147_v20 }
 0x12e   :  { %148 = vadd.xlane.f32.xlu1 %v146_v22 }
 0x199   :  { %v151_v23 = vpop.xlane.xlu1 %150 }
 0x19a   :  { %v153_v24 = vcvt.f32.s32 %v151_v23 }
 0x19c   :  { %v154_v26 = vshll.u32 %v153_v24, 16 }
 0x1a1   :  { %v149_v25 = vpop.xlane.xlu1 %148 }
 0x1a2   :  { %v152_v27 = vcvt.f32.s32 %v149_v25 }
 0x1a4   :  { %v155_v28 = vadd.s32 %v154_v26, %v152_v27 }
 0x1a6   :  { %v156_v29 = vrot.slane %v155_v28, 4 }
 0x1a8   :  { %v157_v30 = vadd.s32 %v156_v29, %v155_v28 }
 0x1aa   :  { %v158_v31 = vrot.slane %v157_v30, 2 }
 0x1ac   :  { %v159_v32 = vadd.s32 %v158_v31, %v157_v30 }
 0x1ae   :  { %v160_v33 = vrot.slane %v159_v32, 1 }
 0x1b0   :  { %v161_v34 = vadd.s32 %v160_v33, %v159_v32 }
 0x1b2   :  { %991 = vpush %v161_v34 }
 0x1e3   :  { %s992_s22 = spop %991 }
 0x1e4   :  { %p163_p1 = scmp.ge.s32.totalorder %s992_s22, 6 }
 0x1e6   :  { %s1280_s21 = smov (!%p163_p1, %s139_s21), %s138_s1 }
 0x1e7   :  { %s165_s23 = sor.u32 268435456, %s1280_s21 }
 0x1e8   :  { %v166_v35 = vstv %s165_s23 }
 0x1e9   :  { %vm167_vm8 = vcmp.ge.s32.totalorder %v1168_v60, %v166_v35 }
 0x1ea   :  { %v168_v36 = vsel %vm167_vm8, 1, %v1145_v61 }
 0x1eb   :  { %v169_v37 = vsel %vm116_vm5, %v168_v36, 0 }
 0x1ec   :  { %v171_v38 = vshrl.u32 %v169_v37, 16  ;;  %v170_v40 = vand.u32 65535, %v169_v37 }
 0x1ee   :  { %v173_v39 = vcvt.s32.f32 %v171_v38  ;;  %v172_v41 = vcvt.s32.f32 %v170_v40 }
 0x1f0   :  { %176 = vadd.xlane.f32.xlu2 %v173_v39 }
 0x1f8   :  { %174 = vadd.xlane.f32.xlu2 %v172_v41 }
 0x263   :  { %v177_v42 = vpop.xlane.xlu2 %176 }
 0x264   :  { %v179_v43 = vcvt.f32.s32 %v177_v42 }
 0x266   :  { %v180_v45 = vshll.u32 %v179_v43, 16 }
 0x26b   :  { %v175_v44 = vpop.xlane.xlu2 %174 }
 0x26c   :  { %v178_v46 = vcvt.f32.s32 %v175_v44 }
 0x26e   :  { %v181_v47 = vadd.s32 %v180_v45, %v178_v46 }
 0x270   :  { %v182_v48 = vrot.slane %v181_v47, 4 }
 0x272   :  { %v183_v49 = vadd.s32 %v182_v48, %v181_v47 }
 0x274   :  { %v184_v50 = vrot.slane %v183_v49, 2 }
 0x276   :  { %v185_v51 = vadd.s32 %v184_v50, %v183_v49 }
 0x278   :  { %v186_v52 = vrot.slane %v185_v51, 1 }
 0x27a   :  { %v187_v53 = vadd.s32 %v186_v52, %v185_v51 }
 0x27c   :  { %993 = vpush %v187_v53 }
 0x2ad   :  { %s994_s24 = spop %993 }
 0x2ae   :  { %p189_p2 = scmp.ge.s32.totalorder %s994_s24, 6 }
 0x2b0   :  { %s1282_s23 = smov (!%p189_p2, %s165_s23), %s1280_s21 }
 0x2b1   :  { %s191_s25 = sor.u32 134217728, %s1282_s23 }
 0x2b2   :  { %v192_v54 = vstv %s191_s25 }
 0x2b3   :  { %vm193_vm9 = vcmp.ge.s32.totalorder %v1168_v60, %v192_v54 }
 0x2b4   :  { %v194_v55 = vsel %vm193_vm9, 1, %v1145_v61 }
 0x2b5   :  { %v195_v56 = vsel %vm116_vm5, %v194_v55, 0 }
 0x2b6   :  { %v197_v57 = vshrl.u32 %v195_v56, 16  ;;  %v196_v58 = vand.u32 65535, %v195_v56 }
 0x2b8   :  { %v199_v59 = vcvt.s32.f32 %v197_v57  ;;  %v198_v62 = vcvt.s32.f32 %v196_v58 }
 0x2ba   :  { %202 = vadd.xlane.f32.xlu0 %v199_v59  ;;  %200 = vadd.xlane.f32.xlu1 %v198_v62 }
 0x32d   :  { %v203_v63 = vpop.xlane.xlu0 %202  ;;  %v201_v0 = vpop.xlane.xlu1 %200 }
 0x32e   :  { %v205_v1 = vcvt.f32.s32 %v203_v63  ;;  %v204_v3 = vcvt.f32.s32 %v201_v0 }
 0x330   :  { %v206_v2 = vshll.u32 %v205_v1, 16 }
 0x332   :  { %v207_v4 = vadd.s32 %v206_v2, %v204_v3 }
 0x334   :  { %v208_v5 = vrot.slane %v207_v4, 4 }
 0x336   :  { %v209_v6 = vadd.s32 %v208_v5, %v207_v4 }
 0x338   :  { %v210_v7 = vrot.slane %v209_v6, 2 }
 0x33a   :  { %v211_v8 = vadd.s32 %v210_v7, %v209_v6 }
 0x33c   :  { %v212_v9 = vrot.slane %v211_v8, 1 }
 0x33e   :  { %v213_v10 = vadd.s32 %v212_v9, %v211_v8 }
 0x340   :  { %995 = vpush %v213_v10 }
 0x371   :  { %s996_s26 = spop %995 }
 0x372   :  { %p215_p3 = scmp.ge.s32.totalorder %s996_s26, 6 }
 0x374   :  { %s1284_s25 = smov (!%p215_p3, %s191_s25), %s1282_s23 }
 0x375   :  { %s217_s27 = sor.u32 67108864, %s1284_s25 }
 0x376   :  { %v218_v11 = vstv %s217_s27 }
 0x377   :  { %vm219_vm10 = vcmp.ge.s32.totalorder %v1168_v60, %v218_v11 }
 0x378   :  { %v220_v12 = vsel %vm219_vm10, 1, %v1145_v61 }
 0x379   :  { %v221_v13 = vsel %vm116_vm5, %v220_v12, 0 }
 0x37a   :  { %v223_v14 = vshrl.u32 %v221_v13, 16  ;;  %v222_v15 = vand.u32 65535, %v221_v13 }
 0x37c   :  { %v225_v16 = vcvt.s32.f32 %v223_v14  ;;  %v224_v17 = vcvt.s32.f32 %v222_v15 }
 0x37e   :  { %228 = vadd.xlane.f32.xlu2 %v225_v16  ;;  %226 = vadd.xlane.f32.xlu0 %v224_v17 }
 0x3f1   :  { %v229_v18 = vpop.xlane.xlu2 %228  ;;  %v227_v19 = vpop.xlane.xlu0 %226 }
 0x3f2   :  { %v231_v20 = vcvt.f32.s32 %v229_v18  ;;  %v230_v22 = vcvt.f32.s32 %v227_v19 }
 0x3f4   :  { %v232_v21 = vshll.u32 %v231_v20, 16 }
 0x3f6   :  { %v233_v23 = vadd.s32 %v232_v21, %v230_v22 }
 0x3f8   :  { %v234_v24 = vrot.slane %v233_v23, 4 }
 0x3fa   :  { %v235_v25 = vadd.s32 %v234_v24, %v233_v23 }
 0x3fc   :  { %v236_v26 = vrot.slane %v235_v25, 2 }
 0x3fe   :  { %v237_v27 = vadd.s32 %v236_v26, %v235_v25 }
 0x400   :  { %v238_v28 = vrot.slane %v237_v27, 1 }
 0x402   :  { %v239_v29 = vadd.s32 %v238_v28, %v237_v27 }
 0x404   :  { %997 = vpush %v239_v29 }
 0x435   :  { %s998_s28 = spop %997 }
 0x436   :  { %p241_p4 = scmp.ge.s32.totalorder %s998_s28, 6 }
 0x438   :  { %s1286_s27 = smov (!%p241_p4, %s217_s27), %s1284_s25 }
 0x439   :  { %s243_s29 = sor.u32 33554432, %s1286_s27 }
 0x43a   :  { %v244_v30 = vstv %s243_s29 }
 0x43b   :  { %vm245_vm11 = vcmp.ge.s32.totalorder %v1168_v60, %v244_v30 }
 0x43c   :  { %v246_v31 = vsel %vm245_vm11, 1, %v1145_v61 }
 0x43d   :  { %v247_v32 = vsel %vm116_vm5, %v246_v31, 0 }
 0x43e   :  { %v249_v33 = vshrl.u32 %v247_v32, 16  ;;  %v248_v34 = vand.u32 65535, %v247_v32 }
 0x440   :  { %v251_v35 = vcvt.s32.f32 %v249_v33  ;;  %v250_v36 = vcvt.s32.f32 %v248_v34 }
 0x442   :  { %254 = vadd.xlane.f32.xlu1 %v251_v35  ;;  %252 = vadd.xlane.f32.xlu2 %v250_v36 }
 0x4b5   :  { %v255_v37 = vpop.xlane.xlu1 %254  ;;  %v253_v38 = vpop.xlane.xlu2 %252 }
 0x4b6   :  { %v257_v39 = vcvt.f32.s32 %v255_v37  ;;  %v256_v41 = vcvt.f32.s32 %v253_v38 }
 0x4b8   :  { %v258_v40 = vshll.u32 %v257_v39, 16 }
 0x4ba   :  { %v259_v42 = vadd.s32 %v258_v40, %v256_v41 }
 0x4bc   :  { %v260_v43 = vrot.slane %v259_v42, 4 }
 0x4be   :  { %v261_v44 = vadd.s32 %v260_v43, %v259_v42 }
 0x4c0   :  { %v262_v45 = vrot.slane %v261_v44, 2 }
 0x4c2   :  { %v263_v46 = vadd.s32 %v262_v45, %v261_v44 }
 0x4c4   :  { %v264_v47 = vrot.slane %v263_v46, 1 }
 0x4c6   :  { %v265_v48 = vadd.s32 %v264_v47, %v263_v46 }
 0x4c8   :  { %999 = vpush %v265_v48 }
 0x4f9   :  { %s1000_s30 = spop %999 }
 0x4fa   :  { %p267_p5 = scmp.ge.s32.totalorder %s1000_s30, 6 }
 0x4fc   :  { %s1288_s29 = smov (!%p267_p5, %s243_s29), %s1286_s27 }
 0x4fd   :  { %s269_s3 = sor.u32 16777216, %s1288_s29 }
 0x4fe   :  { %v270_v49 = vstv %s269_s3 }
 0x4ff   :  { %vm271_vm12 = vcmp.ge.s32.totalorder %v1168_v60, %v270_v49 }
 0x500   :  { %v272_v50 = vsel %vm271_vm12, 1, %v1145_v61 }
 0x501   :  { %v273_v51 = vsel %vm116_vm5, %v272_v50, 0 }
 0x502   :  { %v275_v52 = vshrl.u32 %v273_v51, 16  ;;  %v274_v53 = vand.u32 65535, %v273_v51 }
 0x504   :  { %v277_v54 = vcvt.s32.f32 %v275_v52  ;;  %v276_v55 = vcvt.s32.f32 %v274_v53 }
 0x506   :  { %280 = vadd.xlane.f32.xlu0 %v277_v54  ;;  %278 = vadd.xlane.f32.xlu1 %v276_v55 }
 0x579   :  { %v281_v56 = vpop.xlane.xlu0 %280  ;;  %v279_v57 = vpop.xlane.xlu1 %278 }
 0x57a   :  { %v283_v58 = vcvt.f32.s32 %v281_v56  ;;  %v282_v62 = vcvt.f32.s32 %v279_v57 }
 0x57c   :  { %v284_v59 = vshll.u32 %v283_v58, 16 }
 0x57e   :  { %v285_v63 = vadd.s32 %v284_v59, %v282_v62 }
 0x580   :  { %v286_v0 = vrot.slane %v285_v63, 4 }
 0x582   :  { %v287_v1 = vadd.s32 %v286_v0, %v285_v63 }
 0x584   :  { %v288_v2 = vrot.slane %v287_v1, 2 }
 0x586   :  { %v289_v3 = vadd.s32 %v288_v2, %v287_v1 }
 0x588   :  { %v290_v4 = vrot.slane %v289_v3, 1 }
 0x58a   :  { %v291_v5 = vadd.s32 %v290_v4, %v289_v3 }
 0x58c   :  { %1001 = vpush %v291_v5 }
 0x5bd   :  { %s1002_s4 = spop %1001 }
 0x5be   :  { %p293_p6 = scmp.ge.s32.totalorder %s1002_s4, 6 }
 0x5c0   :  { %s1290_s3 = smov (!%p293_p6, %s269_s3), %s1288_s29 }
 0x5c1   :  { %s295_s5 = sor.u32 8388608, %s1290_s3 }
 0x5c2   :  { %v296_v6 = vstv %s295_s5 }
 0x5c3   :  { %vm297_vm13 = vcmp.ge.s32.totalorder %v1168_v60, %v296_v6 }
 0x5c4   :  { %v298_v7 = vsel %vm297_vm13, 1, %v1145_v61 }
 0x5c5   :  { %v299_v8 = vsel %vm116_vm5, %v298_v7, 0 }
 0x5c6   :  { %v301_v9 = vshrl.u32 %v299_v8, 16  ;;  %v300_v10 = vand.u32 65535, %v299_v8 }
 0x5c8   :  { %v303_v11 = vcvt.s32.f32 %v301_v9  ;;  %v302_v12 = vcvt.s32.f32 %v300_v10 }
 0x5ca   :  { %306 = vadd.xlane.f32.xlu2 %v303_v11  ;;  %304 = vadd.xlane.f32.xlu0 %v302_v12 }
 0x63d   :  { %v307_v13 = vpop.xlane.xlu2 %306  ;;  %v305_v14 = vpop.xlane.xlu0 %304 }
 0x63e   :  { %v309_v15 = vcvt.f32.s32 %v307_v13  ;;  %v308_v17 = vcvt.f32.s32 %v305_v14 }
 0x640   :  { %v310_v16 = vshll.u32 %v309_v15, 16 }
 0x642   :  { %v311_v18 = vadd.s32 %v310_v16, %v308_v17 }
 0x644   :  { %v312_v19 = vrot.slane %v311_v18, 4 }
 0x646   :  { %v313_v20 = vadd.s32 %v312_v19, %v311_v18 }
 0x648   :  { %v314_v21 = vrot.slane %v313_v20, 2 }
 0x64a   :  { %v315_v22 = vadd.s32 %v314_v21, %v313_v20 }
 0x64c   :  { %v316_v23 = vrot.slane %v315_v22, 1 }
 0x64e   :  { %v317_v24 = vadd.s32 %v316_v23, %v315_v22 }
 0x650   :  { %1003 = vpush %v317_v24 }
 0x681   :  { %s1004_s6 = spop %1003 }
 0x682   :  { %p319_p7 = scmp.ge.s32.totalorder %s1004_s6, 6 }
 0x684   :  { %s1292_s5 = smov (!%p319_p7, %s295_s5), %s1290_s3 }
 0x685   :  { %s321_s7 = sor.u32 4194304, %s1292_s5 }
 0x686   :  { %v322_v25 = vstv %s321_s7 }
 0x687   :  { %vm323_vm14 = vcmp.ge.s32.totalorder %v1168_v60, %v322_v25 }
 0x688   :  { %v324_v26 = vsel %vm323_vm14, 1, %v1145_v61 }
 0x689   :  { %v325_v27 = vsel %vm116_vm5, %v324_v26, 0 }
 0x68a   :  { %v327_v28 = vshrl.u32 %v325_v27, 16  ;;  %v326_v29 = vand.u32 65535, %v325_v27 }
 0x68c   :  { %v329_v30 = vcvt.s32.f32 %v327_v28  ;;  %v328_v31 = vcvt.s32.f32 %v326_v29 }
 0x68e   :  { %332 = vadd.xlane.f32.xlu1 %v329_v30  ;;  %330 = vadd.xlane.f32.xlu2 %v328_v31 }
 0x701   :  { %v333_v32 = vpop.xlane.xlu1 %332  ;;  %v331_v33 = vpop.xlane.xlu2 %330 }
 0x702   :  { %v335_v34 = vcvt.f32.s32 %v333_v32  ;;  %v334_v36 = vcvt.f32.s32 %v331_v33 }
 0x704   :  { %v336_v35 = vshll.u32 %v335_v34, 16 }
 0x706   :  { %v337_v37 = vadd.s32 %v336_v35, %v334_v36 }
 0x708   :  { %v338_v38 = vrot.slane %v337_v37, 4 }
 0x70a   :  { %v339_v39 = vadd.s32 %v338_v38, %v337_v37 }
 0x70c   :  { %v340_v40 = vrot.slane %v339_v39, 2 }
 0x70e   :  { %v341_v41 = vadd.s32 %v340_v40, %v339_v39 }
 0x710   :  { %v342_v42 = vrot.slane %v341_v41, 1 }
 0x712   :  { %v343_v43 = vadd.s32 %v342_v42, %v341_v41 }
 0x714   :  { %1005 = vpush %v343_v43 }
 0x745   :  { %s1006_s8 = spop %1005 }
 0x746   :  { %p345_p8 = scmp.ge.s32.totalorder %s1006_s8, 6 }
 0x748   :  { %s1294_s7 = smov (!%p345_p8, %s321_s7), %s1292_s5 }
 0x749   :  { %s347_s9 = sor.u32 2097152, %s1294_s7 }
 0x74a   :  { %v348_v44 = vstv %s347_s9 }
 0x74b   :  { %vm349_vm15 = vcmp.ge.s32.totalorder %v1168_v60, %v348_v44 }
 0x74c   :  { %v350_v45 = vsel %vm349_vm15, 1, %v1145_v61 }
 0x74d   :  { %v351_v46 = vsel %vm116_vm5, %v350_v45, 0 }
 0x74e   :  { %v353_v47 = vshrl.u32 %v351_v46, 16  ;;  %v352_v48 = vand.u32 65535, %v351_v46 }
 0x750   :  { %v355_v49 = vcvt.s32.f32 %v353_v47  ;;  %v354_v50 = vcvt.s32.f32 %v352_v48 }
 0x752   :  { %358 = vadd.xlane.f32.xlu0 %v355_v49  ;;  %356 = vadd.xlane.f32.xlu1 %v354_v50 }
 0x7c5   :  { %v359_v51 = vpop.xlane.xlu0 %358  ;;  %v357_v52 = vpop.xlane.xlu1 %356 }
 0x7c6   :  { %v361_v53 = vcvt.f32.s32 %v359_v51  ;;  %v360_v55 = vcvt.f32.s32 %v357_v52 }
 0x7c8   :  { %v362_v54 = vshll.u32 %v361_v53, 16 }
 0x7ca   :  { %v363_v56 = vadd.s32 %v362_v54, %v360_v55 }
 0x7cc   :  { %v364_v57 = vrot.slane %v363_v56, 4 }
 0x7ce   :  { %v365_v58 = vadd.s32 %v364_v57, %v363_v56 }
 0x7d0   :  { %v366_v59 = vrot.slane %v365_v58, 2 }
 0x7d2   :  { %v367_v62 = vadd.s32 %v366_v59, %v365_v58 }
 0x7d4   :  { %v368_v63 = vrot.slane %v367_v62, 1 }
 0x7d6   :  { %v369_v0 = vadd.s32 %v368_v63, %v367_v62 }
 0x7d8   :  { %1007 = vpush %v369_v0 }
 0x809   :  { %s1008_s10 = spop %1007 }
 0x80a   :  { %p371_p9 = scmp.ge.s32.totalorder %s1008_s10, 6 }
 0x80c   :  { %s1296_s9 = smov (!%p371_p9, %s347_s9), %s1294_s7 }
 0x80d   :  { %s373_s11 = sor.u32 1048576, %s1296_s9 }
 0x80e   :  { %v374_v1 = vstv %s373_s11 }
 0x80f   :  { %vm375_vm0 = vcmp.ge.s32.totalorder %v1168_v60, %v374_v1 }
 0x810   :  { %v376_v2 = vsel %vm375_vm0, 1, %v1145_v61 }
 0x811   :  { %v377_v3 = vsel %vm116_vm5, %v376_v2, 0 }
 0x812   :  { %v379_v4 = vshrl.u32 %v377_v3, 16  ;;  %v378_v5 = vand.u32 65535, %v377_v3 }
 0x814   :  { %v381_v6 = vcvt.s32.f32 %v379_v4  ;;  %v380_v7 = vcvt.s32.f32 %v378_v5 }
 0x816   :  { %384 = vadd.xlane.f32.xlu2 %v381_v6  ;;  %382 = vadd.xlane.f32.xlu0 %v380_v7 }
 0x889   :  { %v385_v8 = vpop.xlane.xlu2 %384  ;;  %v383_v9 = vpop.xlane.xlu0 %382 }
 0x88a   :  { %v387_v10 = vcvt.f32.s32 %v385_v8  ;;  %v386_v12 = vcvt.f32.s32 %v383_v9 }
 0x88c   :  { %v388_v11 = vshll.u32 %v387_v10, 16 }
 0x88e   :  { %v389_v13 = vadd.s32 %v388_v11, %v386_v12 }
 0x890   :  { %v390_v14 = vrot.slane %v389_v13, 4 }
 0x892   :  { %v391_v15 = vadd.s32 %v390_v14, %v389_v13 }
 0x894   :  { %v392_v16 = vrot.slane %v391_v15, 2 }
 0x896   :  { %v393_v17 = vadd.s32 %v392_v16, %v391_v15 }
 0x898   :  { %v394_v18 = vrot.slane %v393_v17, 1 }
 0x89a   :  { %v395_v19 = vadd.s32 %v394_v18, %v393_v17 }
 0x89c   :  { %1009 = vpush %v395_v19 }
 0x8cd   :  { %s1010_s12 = spop %1009 }
 0x8ce   :  { %p397_p10 = scmp.ge.s32.totalorder %s1010_s12, 6 }
 0x8d0   :  { %s1298_s11 = smov (!%p397_p10, %s373_s11), %s1296_s9 }
 0x8d1   :  { %s399_s13 = sor.u32 524288, %s1298_s11 }
 0x8d2   :  { %v400_v20 = vstv %s399_s13 }
 0x8d3   :  { %vm401_vm1 = vcmp.ge.s32.totalorder %v1168_v60, %v400_v20 }
 0x8d4   :  { %v402_v21 = vsel %vm401_vm1, 1, %v1145_v61 }
 0x8d5   :  { %v403_v22 = vsel %vm116_vm5, %v402_v21, 0 }
 0x8d6   :  { %v405_v23 = vshrl.u32 %v403_v22, 16  ;;  %v404_v24 = vand.u32 65535, %v403_v22 }
 0x8d8   :  { %v407_v25 = vcvt.s32.f32 %v405_v23  ;;  %v406_v26 = vcvt.s32.f32 %v404_v24 }
 0x8da   :  { %410 = vadd.xlane.f32.xlu1 %v407_v25  ;;  %408 = vadd.xlane.f32.xlu2 %v406_v26 }
 0x94d   :  { %v411_v27 = vpop.xlane.xlu1 %410  ;;  %v409_v28 = vpop.xlane.xlu2 %408 }
 0x94e   :  { %v413_v29 = vcvt.f32.s32 %v411_v27  ;;  %v412_v31 = vcvt.f32.s32 %v409_v28 }
 0x950   :  { %v414_v30 = vshll.u32 %v413_v29, 16 }
 0x952   :  { %v415_v32 = vadd.s32 %v414_v30, %v412_v31 }
 0x954   :  { %v416_v33 = vrot.slane %v415_v32, 4 }
 0x956   :  { %v417_v34 = vadd.s32 %v416_v33, %v415_v32 }
 0x958   :  { %v418_v35 = vrot.slane %v417_v34, 2 }
 0x95a   :  { %v419_v36 = vadd.s32 %v418_v35, %v417_v34 }
 0x95c   :  { %v420_v37 = vrot.slane %v419_v36, 1 }
 0x95e   :  { %v421_v38 = vadd.s32 %v420_v37, %v419_v36 }
 0x960   :  { %1011 = vpush %v421_v38 }
 0x991   :  { %s1012_s14 = spop %1011 }
 0x992   :  { %p423_p11 = scmp.ge.s32.totalorder %s1012_s14, 6 }
 0x994   :  { %s1300_s13 = smov (!%p423_p11, %s399_s13), %s1298_s11 }
 0x995   :  { %s425_s15 = sor.u32 262144, %s1300_s13 }
 0x996   :  { %v426_v39 = vstv %s425_s15 }
 0x997   :  { %vm427_vm2 = vcmp.ge.s32.totalorder %v1168_v60, %v426_v39 }
 0x998   :  { %v428_v40 = vsel %vm427_vm2, 1, %v1145_v61 }
 0x999   :  { %v429_v41 = vsel %vm116_vm5, %v428_v40, 0 }
 0x99a   :  { %v431_v42 = vshrl.u32 %v429_v41, 16  ;;  %v430_v43 = vand.u32 65535, %v429_v41 }
 0x99c   :  { %v433_v44 = vcvt.s32.f32 %v431_v42  ;;  %v432_v45 = vcvt.s32.f32 %v430_v43 }
 0x99e   :  { %436 = vadd.xlane.f32.xlu0 %v433_v44  ;;  %434 = vadd.xlane.f32.xlu1 %v432_v45 }
 0xa11   :  { %v437_v46 = vpop.xlane.xlu0 %436  ;;  %v435_v47 = vpop.xlane.xlu1 %434 }
 0xa12   :  { %v439_v48 = vcvt.f32.s32 %v437_v46  ;;  %v438_v50 = vcvt.f32.s32 %v435_v47 }
 0xa14   :  { %v440_v49 = vshll.u32 %v439_v48, 16 }
 0xa16   :  { %v441_v51 = vadd.s32 %v440_v49, %v438_v50 }
 0xa18   :  { %v442_v52 = vrot.slane %v441_v51, 4 }
 0xa1a   :  { %v443_v53 = vadd.s32 %v442_v52, %v441_v51 }
 0xa1c   :  { %v444_v54 = vrot.slane %v443_v53, 2 }
 0xa1e   :  { %v445_v55 = vadd.s32 %v444_v54, %v443_v53 }
 0xa20   :  { %v446_v56 = vrot.slane %v445_v55, 1 }
 0xa22   :  { %v447_v57 = vadd.s32 %v446_v56, %v445_v55 }
 0xa24   :  { %1013 = vpush %v447_v57 }
 0xa55   :  { %s1014_s16 = spop %1013 }
 0xa56   :  { %p449_p12 = scmp.ge.s32.totalorder %s1014_s16, 6 }
 0xa58   :  { %s1302_s15 = smov (!%p449_p12, %s425_s15), %s1300_s13 }
 0xa59   :  { %s451_s17 = sor.u32 131072, %s1302_s15 }
 0xa5a   :  { %v452_v58 = vstv %s451_s17 }
 0xa5b   :  { %vm453_vm3 = vcmp.ge.s32.totalorder %v1168_v60, %v452_v58 }
 0xa5c   :  { %v454_v59 = vsel %vm453_vm3, 1, %v1145_v61 }
 0xa5d   :  { %v455_v62 = vsel %vm116_vm5, %v454_v59, 0 }
 0xa5e   :  { %v457_v63 = vshrl.u32 %v455_v62, 16  ;;  %v456_v0 = vand.u32 65535, %v455_v62 }
 0xa60   :  { %v459_v1 = vcvt.s32.f32 %v457_v63  ;;  %v458_v2 = vcvt.s32.f32 %v456_v0 }
 0xa62   :  { %462 = vadd.xlane.f32.xlu2 %v459_v1  ;;  %460 = vadd.xlane.f32.xlu0 %v458_v2 }
 0xad5   :  { %v463_v3 = vpop.xlane.xlu2 %462  ;;  %v461_v4 = vpop.xlane.xlu0 %460 }
 0xad6   :  { %v465_v5 = vcvt.f32.s32 %v463_v3  ;;  %v464_v7 = vcvt.f32.s32 %v461_v4 }
 0xad8   :  { %v466_v6 = vshll.u32 %v465_v5, 16 }
 0xada   :  { %v467_v8 = vadd.s32 %v466_v6, %v464_v7 }
 0xadc   :  { %v468_v9 = vrot.slane %v467_v8, 4 }
 0xade   :  { %v469_v10 = vadd.s32 %v468_v9, %v467_v8 }
 0xae0   :  { %v470_v11 = vrot.slane %v469_v10, 2 }
 0xae2   :  { %v471_v12 = vadd.s32 %v470_v11, %v469_v10 }
 0xae4   :  { %v472_v13 = vrot.slane %v471_v12, 1 }
 0xae6   :  { %v473_v14 = vadd.s32 %v472_v13, %v471_v12 }
 0xae8   :  { %1015 = vpush %v473_v14 }
 0xb19   :  { %s1016_s18 = spop %1015 }
 0xb1a   :  { %p475_p13 = scmp.ge.s32.totalorder %s1016_s18, 6 }
 0xb1c   :  { %s1304_s17 = smov (!%p475_p13, %s451_s17), %s1302_s15 }
 0xb1d   :  { %s477_s19 = sor.u32 65536, %s1304_s17 }
 0xb1e   :  { %v478_v15 = vstv %s477_s19 }
 0xb1f   :  { %vm479_vm4 = vcmp.ge.s32.totalorder %v1168_v60, %v478_v15 }
 0xb20   :  { %v480_v16 = vsel %vm479_vm4, 1, %v1145_v61 }
 0xb21   :  { %v481_v17 = vsel %vm116_vm5, %v480_v16, 0 }
 0xb22   :  { %v483_v18 = vshrl.u32 %v481_v17, 16  ;;  %v482_v19 = vand.u32 65535, %v481_v17 }
 0xb24   :  { %v485_v20 = vcvt.s32.f32 %v483_v18  ;;  %v484_v21 = vcvt.s32.f32 %v482_v19 }
 0xb26   :  { %488 = vadd.xlane.f32.xlu1 %v485_v20  ;;  %486 = vadd.xlane.f32.xlu2 %v484_v21 }
 0xb99   :  { %v489_v22 = vpop.xlane.xlu1 %488  ;;  %v487_v23 = vpop.xlane.xlu2 %486 }
 0xb9a   :  { %v491_v24 = vcvt.f32.s32 %v489_v22  ;;  %v490_v26 = vcvt.f32.s32 %v487_v23 }
 0xb9c   :  { %v492_v25 = vshll.u32 %v491_v24, 16 }
 0xb9e   :  { %v493_v27 = vadd.s32 %v492_v25, %v490_v26 }
 0xba0   :  { %v494_v28 = vrot.slane %v493_v27, 4 }
 0xba2   :  { %v495_v29 = vadd.s32 %v494_v28, %v493_v27 }
 0xba4   :  { %v496_v30 = vrot.slane %v495_v29, 2 }
 0xba6   :  { %v497_v31 = vadd.s32 %v496_v30, %v495_v29 }
 0xba8   :  { %v498_v32 = vrot.slane %v497_v31, 1 }
 0xbaa   :  { %v499_v33 = vadd.s32 %v498_v32, %v497_v31 }
 0xbac   :  { %1017 = vpush %v499_v33 }
 0xbdd   :  { %s1018_s20 = spop %1017 }
 0xbde   :  { %p501_p0 = scmp.ge.s32.totalorder %s1018_s20, 6 }
 0xbe0   :  { %s1306_s19 = smov (!%p501_p0, %s477_s19), %s1304_s17 }
 0xbe1   :  { %s503_s0 = sor.u32 32768, %s1306_s19 }
 0xbe2   :  { %v504_v34 = vstv %s503_s0 }
 0xbe3   :  { %vm505_vm6 = vcmp.ge.s32.totalorder %v1168_v60, %v504_v34 }
 0xbe4   :  { %v506_v35 = vsel %vm505_vm6, 1, %v1145_v61 }
 0xbe5   :  { %v507_v36 = vsel %vm116_vm5, %v506_v35, 0 }
 0xbe6   :  { %v509_v37 = vshrl.u32 %v507_v36, 16  ;;  %v508_v38 = vand.u32 65535, %v507_v36 }
 0xbe8   :  { %v511_v39 = vcvt.s32.f32 %v509_v37  ;;  %v510_v40 = vcvt.s32.f32 %v508_v38 }
 0xbea   :  { %514 = vadd.xlane.f32.xlu0 %v511_v39  ;;  %512 = vadd.xlane.f32.xlu1 %v510_v40 }
 0xc5d   :  { %v515_v41 = vpop.xlane.xlu0 %514  ;;  %v513_v42 = vpop.xlane.xlu1 %512 }
 0xc5e   :  { %v517_v43 = vcvt.f32.s32 %v515_v41  ;;  %v516_v45 = vcvt.f32.s32 %v513_v42 }
 0xc60   :  { %v518_v44 = vshll.u32 %v517_v43, 16 }
 0xc62   :  { %v519_v46 = vadd.s32 %v518_v44, %v516_v45 }
 0xc64   :  { %v520_v47 = vrot.slane %v519_v46, 4 }
 0xc66   :  { %v521_v48 = vadd.s32 %v520_v47, %v519_v46 }
 0xc68   :  { %v522_v49 = vrot.slane %v521_v48, 2 }
 0xc6a   :  { %v523_v50 = vadd.s32 %v522_v49, %v521_v48  ;;  %v1227_v48 = vld [vmem:[#allocation2] sm:$0x1] }
 0xc6c   :  { %v524_v51 = vrot.slane %v523_v50, 1 }
 0xc6e   :  { %v525_v52 = vadd.s32 %v524_v51, %v523_v50 }
 0xc70   :  { %1019 = vpush %v525_v52 }
 0xca1   :  { %s1020_s1 = spop %1019 }
 0xca2   :  { %p527_p1 = scmp.ge.s32.totalorder %s1020_s1, 6 }
 0xca4   :  { %s1308_s0 = smov (!%p527_p1, %s503_s0), %s1306_s19 }
 0xca5   :  { %s529_s21 = sor.u32 16384, %s1308_s0 }
 0xca6   :  { %v530_v53 = vstv %s529_s21 }
 0xca7   :  { %vm531_vm7 = vcmp.ge.s32.totalorder %v1168_v60, %v530_v53 }
 0xca8   :  { %v532_v54 = vsel %vm531_vm7, 1, %v1145_v61 }
 0xca9   :  { %v533_v55 = vsel %vm116_vm5, %v532_v54, 0 }
 0xcaa   :  { %v535_v56 = vshrl.u32 %v533_v55, 16  ;;  %v534_v57 = vand.u32 65535, %v533_v55 }
 0xcac   :  { %v537_v58 = vcvt.s32.f32 %v535_v56  ;;  %v536_v59 = vcvt.s32.f32 %v534_v57 }
 0xcae   :  { %540 = vadd.xlane.f32.xlu2 %v537_v58  ;;  %538 = vadd.xlane.f32.xlu0 %v536_v59 }
 0xd21   :  { %v541_v62 = vpop.xlane.xlu2 %540  ;;  %v539_v63 = vpop.xlane.xlu0 %538 }
 0xd22   :  { %v543_v0 = vcvt.f32.s32 %v541_v62  ;;  %v542_v2 = vcvt.f32.s32 %v539_v63 }
 0xd24   :  { %v544_v1 = vshll.u32 %v543_v0, 16 }
 0xd26   :  { %v545_v3 = vadd.s32 %v544_v1, %v542_v2 }
 0xd28   :  { %v546_v4 = vrot.slane %v545_v3, 4 }
 0xd2a   :  { %v547_v5 = vadd.s32 %v546_v4, %v545_v3 }
 0xd2c   :  { %v548_v6 = vrot.slane %v547_v5, 2 }
 0xd2e   :  { %v549_v7 = vadd.s32 %v548_v6, %v547_v5 }
 0xd30   :  { %v550_v8 = vrot.slane %v549_v7, 1 }
 0xd32   :  { %v551_v9 = vadd.s32 %v550_v8, %v549_v7 }
 0xd34   :  { %1021 = vpush %v551_v9 }
 0xd65   :  { %s1022_s22 = spop %1021 }
 0xd66   :  { %p553_p2 = scmp.ge.s32.totalorder %s1022_s22, 6 }
 0xd68   :  { %s1310_s21 = smov (!%p553_p2, %s529_s21), %s1308_s0 }
 0xd69   :  { %s555_s23 = sor.u32 8192, %s1310_s21 }
 0xd6a   :  { %v556_v10 = vstv %s555_s23 }
 0xd6b   :  { %vm557_vm8 = vcmp.ge.s32.totalorder %v1168_v60, %v556_v10 }
 0xd6c   :  { %v558_v11 = vsel %vm557_vm8, 1, %v1145_v61 }
 0xd6d   :  { %v559_v12 = vsel %vm116_vm5, %v558_v11, 0 }
 0xd6e   :  { %v561_v13 = vshrl.u32 %v559_v12, 16  ;;  %v560_v14 = vand.u32 65535, %v559_v12 }
 0xd70   :  { %v563_v15 = vcvt.s32.f32 %v561_v13  ;;  %v562_v16 = vcvt.s32.f32 %v560_v14 }
 0xd72   :  { %566 = vadd.xlane.f32.xlu1 %v563_v15  ;;  %564 = vadd.xlane.f32.xlu2 %v562_v16 }
 0xde5   :  { %v567_v17 = vpop.xlane.xlu1 %566  ;;  %v565_v18 = vpop.xlane.xlu2 %564 }
 0xde6   :  { %v569_v19 = vcvt.f32.s32 %v567_v17  ;;  %v568_v21 = vcvt.f32.s32 %v565_v18 }
 0xde8   :  { %v570_v20 = vshll.u32 %v569_v19, 16 }
 0xdea   :  { %v571_v22 = vadd.s32 %v570_v20, %v568_v21 }
 0xdec   :  { %v572_v23 = vrot.slane %v571_v22, 4 }
 0xdee   :  { %v573_v24 = vadd.s32 %v572_v23, %v571_v22 }
 0xdf0   :  { %v574_v25 = vrot.slane %v573_v24, 2 }
 0xdf2   :  { %v575_v26 = vadd.s32 %v574_v25, %v573_v24 }
 0xdf4   :  { %v576_v27 = vrot.slane %v575_v26, 1 }
 0xdf6   :  { %v577_v28 = vadd.s32 %v576_v27, %v575_v26 }
 0xdf8   :  { %1023 = vpush %v577_v28 }
 0xe29   :  { %s1024_s24 = spop %1023 }
 0xe2a   :  { %p579_p3 = scmp.ge.s32.totalorder %s1024_s24, 6 }
 0xe2c   :  { %s1312_s23 = smov (!%p579_p3, %s555_s23), %s1310_s21 }
 0xe2d   :  { %s581_s25 = sor.u32 4096, %s1312_s23 }
 0xe2e   :  { %v582_v29 = vstv %s581_s25 }
 0xe2f   :  { %vm583_vm9 = vcmp.ge.s32.totalorder %v1168_v60, %v582_v29 }
 0xe30   :  { %v584_v30 = vsel %vm583_vm9, 1, %v1145_v61 }
 0xe31   :  { %v585_v31 = vsel %vm116_vm5, %v584_v30, 0 }
 0xe32   :  { %v587_v32 = vshrl.u32 %v585_v31, 16  ;;  %v586_v33 = vand.u32 65535, %v585_v31 }
 0xe34   :  { %v589_v34 = vcvt.s32.f32 %v587_v32  ;;  %v588_v35 = vcvt.s32.f32 %v586_v33 }
 0xe36   :  { %592 = vadd.xlane.f32.xlu0 %v589_v34  ;;  %590 = vadd.xlane.f32.xlu1 %v588_v35 }
 0xea9   :  { %v593_v36 = vpop.xlane.xlu0 %592  ;;  %v591_v37 = vpop.xlane.xlu1 %590 }
 0xeaa   :  { %v595_v38 = vcvt.f32.s32 %v593_v36  ;;  %v594_v40 = vcvt.f32.s32 %v591_v37 }
 0xeac   :  { %v596_v39 = vshll.u32 %v595_v38, 16 }
 0xeae   :  { %v597_v41 = vadd.s32 %v596_v39, %v594_v40 }
 0xeb0   :  { %v598_v42 = vrot.slane %v597_v41, 4 }
 0xeb2   :  { %v599_v43 = vadd.s32 %v598_v42, %v597_v41 }
 0xeb4   :  { %v600_v44 = vrot.slane %v599_v43, 2 }
 0xeb6   :  { %v601_v60 = vadd.s32 %v600_v44, %v599_v43 }
 0xeb8   :  { %v602_v45 = vrot.slane %v601_v60, 1 }
 0xeba   :  { %v603_v46 = vadd.s32 %v602_v45, %v601_v60 }
 0xebc   :  { %1025 = vpush %v603_v46 }
 0xeed   :  { %s1026_s26 = spop %1025 }
 0xeee   :  { %p605_p4 = scmp.ge.s32.totalorder %s1026_s26, 6 }
 0xef0   :  { %s1314_s25 = smov (!%p605_p4, %s581_s25), %s1312_s23 }
 0xef1   :  { %s607_s27 = sor.u32 2048, %s1314_s25 }
 0xef2   :  { %v608_v47 = vstv %s607_s27 }
 0xef3   :  { %vm609_vm10 = vcmp.ge.s32.totalorder %v1227_v48, %v608_v47 }
 0xef4   :  { %v610_v49 = vsel %vm609_vm10, 1, %v1145_v61 }
 0xef5   :  { %v611_v50 = vsel %vm116_vm5, %v610_v49, 0 }
 0xef6   :  { %v613_v51 = vshrl.u32 %v611_v50, 16  ;;  %v612_v52 = vand.u32 65535, %v611_v50 }
 0xef8   :  { %v615_v53 = vcvt.s32.f32 %v613_v51  ;;  %v614_v54 = vcvt.s32.f32 %v612_v52 }
 0xefa   :  { %618 = vadd.xlane.f32.xlu2 %v615_v53  ;;  %616 = vadd.xlane.f32.xlu0 %v614_v54 }
 0xf6d   :  { %v619_v55 = vpop.xlane.xlu2 %618  ;;  %v617_v56 = vpop.xlane.xlu0 %616 }
 0xf6e   :  { %v621_v57 = vcvt.f32.s32 %v619_v55  ;;  %v620_v59 = vcvt.f32.s32 %v617_v56 }
 0xf70   :  { %v622_v58 = vshll.u32 %v621_v57, 16 }
 0xf72   :  { %v623_v62 = vadd.s32 %v622_v58, %v620_v59 }
 0xf74   :  { %v624_v63 = vrot.slane %v623_v62, 4 }
 0xf76   :  { %v625_v0 = vadd.s32 %v624_v63, %v623_v62 }
 0xf78   :  { %v626_v1 = vrot.slane %v625_v0, 2 }
 0xf7a   :  { %v627_v2 = vadd.s32 %v626_v1, %v625_v0 }
 0xf7c   :  { %v628_v3 = vrot.slane %v627_v2, 1 }
 0xf7e   :  { %v629_v4 = vadd.s32 %v628_v3, %v627_v2 }
 0xf80   :  { %1027 = vpush %v629_v4 }
 0xfb1   :  { %s1028_s28 = spop %1027 }
 0xfb2   :  { %p631_p5 = scmp.ge.s32.totalorder %s1028_s28, 6 }
 0xfb4   :  { %s1316_s27 = smov (!%p631_p5, %s607_s27), %s1314_s25 }
 0xfb5   :  { %s633_s29 = sor.u32 1024, %s1316_s27 }
 0xfb6   :  { %v634_v5 = vstv %s633_s29 }
 0xfb7   :  { %vm635_vm11 = vcmp.ge.s32.totalorder %v1227_v48, %v634_v5 }
 0xfb8   :  { %v636_v6 = vsel %vm635_vm11, 1, %v1145_v61 }
 0xfb9   :  { %v637_v7 = vsel %vm116_vm5, %v636_v6, 0 }
 0xfba   :  { %v639_v8 = vshrl.u32 %v637_v7, 16  ;;  %v638_v9 = vand.u32 65535, %v637_v7 }
 0xfbc   :  { %v641_v10 = vcvt.s32.f32 %v639_v8  ;;  %v640_v11 = vcvt.s32.f32 %v638_v9 }
 0xfbe   :  { %644 = vadd.xlane.f32.xlu1 %v641_v10  ;;  %642 = vadd.xlane.f32.xlu2 %v640_v11 }
0x1031   :  { %v645_v12 = vpop.xlane.xlu1 %644  ;;  %v643_v13 = vpop.xlane.xlu2 %642 }
0x1032   :  { %v647_v14 = vcvt.f32.s32 %v645_v12  ;;  %v646_v16 = vcvt.f32.s32 %v643_v13 }
0x1034   :  { %v648_v15 = vshll.u32 %v647_v14, 16 }
0x1036   :  { %v649_v17 = vadd.s32 %v648_v15, %v646_v16 }
0x1038   :  { %v650_v18 = vrot.slane %v649_v17, 4 }
0x103a   :  { %v651_v19 = vadd.s32 %v650_v18, %v649_v17 }
0x103c   :  { %v652_v20 = vrot.slane %v651_v19, 2 }
0x103e   :  { %v653_v21 = vadd.s32 %v652_v20, %v651_v19 }
0x1040   :  { %v654_v22 = vrot.slane %v653_v21, 1 }
0x1042   :  { %v655_v23 = vadd.s32 %v654_v22, %v653_v21 }
0x1044   :  { %1029 = vpush %v655_v23 }
0x1075   :  { %s1030_s30 = spop %1029 }
0x1076   :  { %p657_p6 = scmp.ge.s32.totalorder %s1030_s30, 6 }
0x1078   :  { %s1318_s29 = smov (!%p657_p6, %s633_s29), %s1316_s27 }
0x1079   :  { %s659_s3 = sor.u32 512, %s1318_s29 }
0x107a   :  { %v660_v24 = vstv %s659_s3 }
0x107b   :  { %vm661_vm12 = vcmp.ge.s32.totalorder %v1227_v48, %v660_v24 }
0x107c   :  { %v662_v25 = vsel %vm661_vm12, 1, %v1145_v61 }
0x107d   :  { %v663_v26 = vsel %vm116_vm5, %v662_v25, 0 }
0x107e   :  { %v665_v27 = vshrl.u32 %v663_v26, 16  ;;  %v664_v28 = vand.u32 65535, %v663_v26 }
0x1080   :  { %v667_v29 = vcvt.s32.f32 %v665_v27  ;;  %v666_v30 = vcvt.s32.f32 %v664_v28 }
0x1082   :  { %670 = vadd.xlane.f32.xlu0 %v667_v29  ;;  %668 = vadd.xlane.f32.xlu1 %v666_v30 }
0x10f5   :  { %v671_v31 = vpop.xlane.xlu0 %670  ;;  %v669_v32 = vpop.xlane.xlu1 %668 }
0x10f6   :  { %v673_v33 = vcvt.f32.s32 %v671_v31  ;;  %v672_v35 = vcvt.f32.s32 %v669_v32 }
0x10f8   :  { %v674_v34 = vshll.u32 %v673_v33, 16 }
0x10fa   :  { %v675_v36 = vadd.s32 %v674_v34, %v672_v35 }
0x10fc   :  { %v676_v37 = vrot.slane %v675_v36, 4 }
0x10fe   :  { %v677_v38 = vadd.s32 %v676_v37, %v675_v36 }
0x1100   :  { %v678_v39 = vrot.slane %v677_v38, 2 }
0x1102   :  { %v679_v40 = vadd.s32 %v678_v39, %v677_v38 }
0x1104   :  { %v680_v41 = vrot.slane %v679_v40, 1 }
0x1106   :  { %v681_v42 = vadd.s32 %v680_v41, %v679_v40 }
0x1108   :  { %1031 = vpush %v681_v42 }
0x1139   :  { %s1032_s4 = spop %1031 }
0x113a   :  { %p683_p7 = scmp.ge.s32.totalorder %s1032_s4, 6  ;;  %s1146_s4 = smov [#allocation8]  }
0x113c   :  { %s1320_s3 = smov (!%p683_p7, %s659_s3), %s1318_s29  ;;  %s977_s29 = sshll.u32 %s1278_s2, 4  ;;  %s978_s29 = int_to_ptr.hbm [resolvable:$true] %s977_s29 }
0x113d   :  { %s685_s5 = sor.u32 256, %s1320_s3 }
0x113e   :  { %v686_v43 = vstv %s685_s5 }
0x113f   :  { %vm687_vm13 = vcmp.ge.s32.totalorder %v1227_v48, %v686_v43 }
0x1140   :  { %v688_v44 = vsel %vm687_vm13, 1, %v1145_v61 }
0x1141   :  { %v689_v60 = vsel %vm116_vm5, %v688_v44, 0 }
0x1142   :  { %v691_v45 = vshrl.u32 %v689_v60, 16  ;;  %v690_v46 = vand.u32 65535, %v689_v60 }
0x1144   :  { %v693_v47 = vcvt.s32.f32 %v691_v45  ;;  %v692_v49 = vcvt.s32.f32 %v690_v46 }
0x1146   :  { %696 = vadd.xlane.f32.xlu2 %v693_v47  ;;  %694 = vadd.xlane.f32.xlu0 %v692_v49 }
0x11b9   :  { %v697_v50 = vpop.xlane.xlu2 %696  ;;  %v695_v51 = vpop.xlane.xlu0 %694 }
0x11ba   :  { %v699_v52 = vcvt.f32.s32 %v697_v50  ;;  %v698_v54 = vcvt.f32.s32 %v695_v51 }
0x11bc   :  { %v700_v53 = vshll.u32 %v699_v52, 16 }
0x11be   :  { %v701_v55 = vadd.s32 %v700_v53, %v698_v54 }
0x11c0   :  { %v702_v56 = vrot.slane %v701_v55, 4 }
0x11c2   :  { %v703_v57 = vadd.s32 %v702_v56, %v701_v55 }
0x11c4   :  { %v704_v58 = vrot.slane %v703_v57, 2 }
0x11c6   :  { %v705_v59 = vadd.s32 %v704_v58, %v703_v57 }
0x11c8   :  { %v706_v62 = vrot.slane %v705_v59, 1 }
0x11ca   :  { %v707_v63 = vadd.s32 %v706_v62, %v705_v59 }
0x11cc   :  { %1033 = vpush %v707_v63 }
0x11fd   :  { %s1034_s6 = spop %1033 }
0x11fe   :  { %p709_p8 = scmp.ge.s32.totalorder %s1034_s6, 6 }
0x1200   :  { %s1322_s5 = smov (!%p709_p8, %s685_s5), %s1320_s3 }
0x1201   :  { %s711_s7 = sor.u32 128, %s1322_s5 }
0x1202   :  { %v712_v0 = vstv %s711_s7 }
0x1203   :  { %vm713_vm14 = vcmp.ge.s32.totalorder %v1227_v48, %v712_v0 }
0x1204   :  { %v714_v1 = vsel %vm713_vm14, 1, %v1145_v61 }
0x1205   :  { %v715_v2 = vsel %vm116_vm5, %v714_v1, 0 }
0x1206   :  { %v717_v3 = vshrl.u32 %v715_v2, 16  ;;  %v716_v4 = vand.u32 65535, %v715_v2 }
0x1208   :  { %v719_v5 = vcvt.s32.f32 %v717_v3  ;;  %v718_v6 = vcvt.s32.f32 %v716_v4 }
0x120a   :  { %722 = vadd.xlane.f32.xlu1 %v719_v5  ;;  %720 = vadd.xlane.f32.xlu2 %v718_v6 }
0x127d   :  { %v723_v7 = vpop.xlane.xlu1 %722  ;;  %v721_v8 = vpop.xlane.xlu2 %720 }
0x127e   :  { %v725_v9 = vcvt.f32.s32 %v723_v7  ;;  %v724_v11 = vcvt.f32.s32 %v721_v8 }
0x1280   :  { %v726_v10 = vshll.u32 %v725_v9, 16 }
0x1282   :  { %v727_v12 = vadd.s32 %v726_v10, %v724_v11 }
0x1284   :  { %v728_v13 = vrot.slane %v727_v12, 4 }
0x1286   :  { %v729_v14 = vadd.s32 %v728_v13, %v727_v12 }
0x1288   :  { %v730_v15 = vrot.slane %v729_v14, 2 }
0x128a   :  { %v731_v16 = vadd.s32 %v730_v15, %v729_v14 }
0x128c   :  { %v732_v17 = vrot.slane %v731_v16, 1 }
0x128e   :  { %v733_v18 = vadd.s32 %v732_v17, %v731_v16 }
0x1290   :  { %1035 = vpush %v733_v18 }
0x12c1   :  { %s1036_s8 = spop %1035 }
0x12c2   :  { %p735_p9 = scmp.ge.s32.totalorder %s1036_s8, 6 }
0x12c4   :  { %s1324_s7 = smov (!%p735_p9, %s711_s7), %s1322_s5 }
0x12c5   :  { %s737_s9 = sor.u32 64, %s1324_s7 }
0x12c6   :  { %v738_v19 = vstv %s737_s9 }
0x12c7   :  { %vm739_vm15 = vcmp.ge.s32.totalorder %v1227_v48, %v738_v19 }
0x12c8   :  { %v740_v20 = vsel %vm739_vm15, 1, %v1145_v61 }
0x12c9   :  { %v741_v21 = vsel %vm116_vm5, %v740_v20, 0 }
0x12ca   :  { %v743_v22 = vshrl.u32 %v741_v21, 16  ;;  %v742_v23 = vand.u32 65535, %v741_v21 }
0x12cc   :  { %v745_v24 = vcvt.s32.f32 %v743_v22  ;;  %v744_v25 = vcvt.s32.f32 %v742_v23 }
0x12ce   :  { %748 = vadd.xlane.f32.xlu0 %v745_v24  ;;  %746 = vadd.xlane.f32.xlu1 %v744_v25 }
0x1341   :  { %v749_v26 = vpop.xlane.xlu0 %748  ;;  %v747_v27 = vpop.xlane.xlu1 %746 }
0x1342   :  { %v751_v28 = vcvt.f32.s32 %v749_v26  ;;  %v750_v30 = vcvt.f32.s32 %v747_v27 }
0x1344   :  { %v752_v29 = vshll.u32 %v751_v28, 16 }
0x1346   :  { %v753_v31 = vadd.s32 %v752_v29, %v750_v30 }
0x1348   :  { %v754_v32 = vrot.slane %v753_v31, 4 }
0x134a   :  { %v755_v33 = vadd.s32 %v754_v32, %v753_v31 }
0x134c   :  { %v756_v34 = vrot.slane %v755_v33, 2 }
0x134e   :  { %v757_v35 = vadd.s32 %v756_v34, %v755_v33 }
0x1350   :  { %v758_v36 = vrot.slane %v757_v35, 1 }
0x1352   :  { %v759_v37 = vadd.s32 %v758_v36, %v757_v35 }
0x1354   :  { %1037 = vpush %v759_v37 }
0x1385   :  { %s1038_s10 = spop %1037 }
0x1386   :  { %p761_p10 = scmp.ge.s32.totalorder %s1038_s10, 6 }
0x1388   :  { %s1326_s9 = smov (!%p761_p10, %s737_s9), %s1324_s7 }
0x1389   :  { %s763_s11 = sor.u32 32, %s1326_s9 }
0x138a   :  { %v764_v38 = vstv %s763_s11 }
0x138b   :  { %vm765_vm0 = vcmp.ge.s32.totalorder %v1227_v48, %v764_v38 }
0x138c   :  { %v766_v39 = vsel %vm765_vm0, 1, %v1145_v61 }
0x138d   :  { %v767_v40 = vsel %vm116_vm5, %v766_v39, 0 }
0x138e   :  { %v769_v41 = vshrl.u32 %v767_v40, 16  ;;  %v768_v42 = vand.u32 65535, %v767_v40 }
0x1390   :  { %v771_v43 = vcvt.s32.f32 %v769_v41  ;;  %v770_v44 = vcvt.s32.f32 %v768_v42 }
0x1392   :  { %774 = vadd.xlane.f32.xlu2 %v771_v43  ;;  %772 = vadd.xlane.f32.xlu0 %v770_v44 }
0x1405   :  { %v775_v60 = vpop.xlane.xlu2 %774  ;;  %v773_v45 = vpop.xlane.xlu0 %772 }
0x1406   :  { %v777_v46 = vcvt.f32.s32 %v775_v60  ;;  %v776_v49 = vcvt.f32.s32 %v773_v45 }
0x1408   :  { %v778_v47 = vshll.u32 %v777_v46, 16 }
0x140a   :  { %v779_v50 = vadd.s32 %v778_v47, %v776_v49 }
0x140c   :  { %v780_v51 = vrot.slane %v779_v50, 4 }
0x140e   :  { %v781_v52 = vadd.s32 %v780_v51, %v779_v50 }
0x1410   :  { %v782_v53 = vrot.slane %v781_v52, 2 }
0x1412   :  { %v783_v54 = vadd.s32 %v782_v53, %v781_v52 }
0x1414   :  { %v784_v55 = vrot.slane %v783_v54, 1 }
0x1416   :  { %v785_v56 = vadd.s32 %v784_v55, %v783_v54 }
0x1418   :  { %1039 = vpush %v785_v56 }
0x1449   :  { %s1040_s12 = spop %1039 }
0x144a   :  { %p787_p11 = scmp.ge.s32.totalorder %s1040_s12, 6 }
0x144c   :  { %s1328_s11 = smov (!%p787_p11, %s763_s11), %s1326_s9 }
0x144d   :  { %s789_s13 = sor.u32 16, %s1328_s11 }
0x144e   :  { %v790_v57 = vstv %s789_s13 }
0x144f   :  { %vm791_vm1 = vcmp.ge.s32.totalorder %v1227_v48, %v790_v57 }
0x1450   :  { %v792_v58 = vsel %vm791_vm1, 1, %v1145_v61 }
0x1451   :  { %v793_v59 = vsel %vm116_vm5, %v792_v58, 0 }
0x1452   :  { %v795_v62 = vshrl.u32 %v793_v59, 16  ;;  %v794_v63 = vand.u32 65535, %v793_v59 }
0x1454   :  { %v797_v0 = vcvt.s32.f32 %v795_v62  ;;  %v796_v1 = vcvt.s32.f32 %v794_v63 }
0x1456   :  { %800 = vadd.xlane.f32.xlu1 %v797_v0  ;;  %798 = vadd.xlane.f32.xlu2 %v796_v1 }
0x14c9   :  { %v801_v2 = vpop.xlane.xlu1 %800  ;;  %v799_v3 = vpop.xlane.xlu2 %798 }
0x14ca   :  { %v803_v4 = vcvt.f32.s32 %v801_v2  ;;  %v802_v6 = vcvt.f32.s32 %v799_v3 }
0x14cc   :  { %v804_v5 = vshll.u32 %v803_v4, 16 }
0x14ce   :  { %v805_v7 = vadd.s32 %v804_v5, %v802_v6 }
0x14d0   :  { %v806_v8 = vrot.slane %v805_v7, 4 }
0x14d2   :  { %v807_v9 = vadd.s32 %v806_v8, %v805_v7 }
0x14d4   :  { %v808_v10 = vrot.slane %v807_v9, 2 }
0x14d6   :  { %v809_v11 = vadd.s32 %v808_v10, %v807_v9 }
0x14d8   :  { %v810_v12 = vrot.slane %v809_v11, 1 }
0x14da   :  { %v811_v13 = vadd.s32 %v810_v12, %v809_v11 }
0x14dc   :  { %1041 = vpush %v811_v13 }
0x150d   :  { %s1042_s14 = spop %1041 }
0x150e   :  { %p813_p12 = scmp.ge.s32.totalorder %s1042_s14, 6 }
0x1510   :  { %s1330_s13 = smov (!%p813_p12, %s789_s13), %s1328_s11 }
0x1511   :  { %s815_s15 = sor.u32 8, %s1330_s13 }
0x1512   :  { %v816_v14 = vstv %s815_s15 }
0x1513   :  { %vm817_vm2 = vcmp.ge.s32.totalorder %v1227_v48, %v816_v14 }
0x1514   :  { %v818_v15 = vsel %vm817_vm2, 1, %v1145_v61 }
0x1515   :  { %v819_v16 = vsel %vm116_vm5, %v818_v15, 0 }
0x1516   :  { %v821_v17 = vshrl.u32 %v819_v16, 16  ;;  %v820_v18 = vand.u32 65535, %v819_v16 }
0x1518   :  { %v823_v19 = vcvt.s32.f32 %v821_v17  ;;  %v822_v20 = vcvt.s32.f32 %v820_v18 }
0x151a   :  { %826 = vadd.xlane.f32.xlu0 %v823_v19  ;;  %824 = vadd.xlane.f32.xlu1 %v822_v20 }
0x158d   :  { %v827_v21 = vpop.xlane.xlu0 %826  ;;  %v825_v22 = vpop.xlane.xlu1 %824 }
0x158e   :  { %v829_v23 = vcvt.f32.s32 %v827_v21  ;;  %v828_v25 = vcvt.f32.s32 %v825_v22 }
0x1590   :  { %v830_v24 = vshll.u32 %v829_v23, 16 }
0x1592   :  { %v831_v26 = vadd.s32 %v830_v24, %v828_v25 }
0x1594   :  { %v832_v27 = vrot.slane %v831_v26, 4 }
0x1596   :  { %v833_v28 = vadd.s32 %v832_v27, %v831_v26 }
0x1598   :  { %v834_v29 = vrot.slane %v833_v28, 2 }
0x159a   :  { %v835_v30 = vadd.s32 %v834_v29, %v833_v28 }
0x159c   :  { %v836_v31 = vrot.slane %v835_v30, 1 }
0x159e   :  { %v837_v32 = vadd.s32 %v836_v31, %v835_v30 }
0x15a0   :  { %1043 = vpush %v837_v32 }
0x15d1   :  { %s1044_s16 = spop %1043 }
0x15d2   :  { %p839_p13 = scmp.ge.s32.totalorder %s1044_s16, 6 }
0x15d4   :  { %s1332_s15 = smov (!%p839_p13, %s815_s15), %s1330_s13 }
0x15d5   :  { %s841_s17 = sor.u32 4, %s1332_s15 }
0x15d6   :  { %v842_v33 = vstv %s841_s17 }
0x15d7   :  { %vm843_vm3 = vcmp.ge.s32.totalorder %v1227_v48, %v842_v33 }
0x15d8   :  { %v844_v34 = vsel %vm843_vm3, 1, %v1145_v61 }
0x15d9   :  { %v845_v35 = vsel %vm116_vm5, %v844_v34, 0 }
0x15da   :  { %v847_v36 = vshrl.u32 %v845_v35, 16  ;;  %v846_v37 = vand.u32 65535, %v845_v35 }
0x15dc   :  { %v849_v38 = vcvt.s32.f32 %v847_v36  ;;  %v848_v39 = vcvt.s32.f32 %v846_v37 }
0x15de   :  { %852 = vadd.xlane.f32.xlu2 %v849_v38  ;;  %850 = vadd.xlane.f32.xlu0 %v848_v39 }
0x1651   :  { %v853_v40 = vpop.xlane.xlu2 %852  ;;  %v851_v41 = vpop.xlane.xlu0 %850 }
0x1652   :  { %v855_v42 = vcvt.f32.s32 %v853_v40  ;;  %v854_v44 = vcvt.f32.s32 %v851_v41 }
0x1654   :  { %v856_v43 = vshll.u32 %v855_v42, 16 }
0x1656   :  { %v857_v60 = vadd.s32 %v856_v43, %v854_v44 }
0x1658   :  { %v858_v45 = vrot.slane %v857_v60, 4 }
0x165a   :  { %v859_v46 = vadd.s32 %v858_v45, %v857_v60 }
0x165c   :  { %v860_v47 = vrot.slane %v859_v46, 2 }
0x165e   :  { %v861_v49 = vadd.s32 %v860_v47, %v859_v46 }
0x1660   :  { %v862_v50 = vrot.slane %v861_v49, 1 }
0x1662   :  { %v863_v51 = vadd.s32 %v862_v50, %v861_v49 }
0x1664   :  { %1045 = vpush %v863_v51 }
0x1695   :  { %s1046_s18 = spop %1045 }
0x1696   :  { %p865_p0 = scmp.ge.s32.totalorder %s1046_s18, 6 }
0x1698   :  { %s1334_s17 = smov (!%p865_p0, %s841_s17), %s1332_s15 }
0x1699   :  { %s867_s19 = sor.u32 2, %s1334_s17 }
0x169a   :  { %v868_v52 = vstv %s867_s19 }
0x169b   :  { %vm869_vm4 = vcmp.ge.s32.totalorder %v1227_v48, %v868_v52 }
0x169c   :  { %v870_v53 = vsel %vm869_vm4, 1, %v1145_v61 }
0x169d   :  { %v871_v54 = vsel %vm116_vm5, %v870_v53, 0 }
0x169e   :  { %v873_v55 = vshrl.u32 %v871_v54, 16  ;;  %v872_v56 = vand.u32 65535, %v871_v54 }
0x16a0   :  { %v875_v57 = vcvt.s32.f32 %v873_v55  ;;  %v874_v58 = vcvt.s32.f32 %v872_v56 }
0x16a2   :  { %878 = vadd.xlane.f32.xlu1 %v875_v57  ;;  %876 = vadd.xlane.f32.xlu2 %v874_v58 }
0x1715   :  { %v879_v59 = vpop.xlane.xlu1 %878  ;;  %v877_v62 = vpop.xlane.xlu2 %876 }
0x1716   :  { %v881_v63 = vcvt.f32.s32 %v879_v59  ;;  %v880_v1 = vcvt.f32.s32 %v877_v62 }
0x1718   :  { %v882_v0 = vshll.u32 %v881_v63, 16 }
0x171a   :  { %v883_v2 = vadd.s32 %v882_v0, %v880_v1 }
0x171c   :  { %v884_v3 = vrot.slane %v883_v2, 4 }
0x171e   :  { %v885_v4 = vadd.s32 %v884_v3, %v883_v2 }
0x1720   :  { %v886_v5 = vrot.slane %v885_v4, 2 }
0x1722   :  { %v887_v6 = vadd.s32 %v886_v5, %v885_v4 }
0x1724   :  { %v888_v7 = vrot.slane %v887_v6, 1 }
0x1726   :  { %v889_v8 = vadd.s32 %v888_v7, %v887_v6 }
0x1728   :  { %1047 = vpush %v889_v8 }
0x1759   :  { %s1048_s20 = spop %1047 }
0x175a   :  { %p891_p1 = scmp.ge.s32.totalorder %s1048_s20, 6 }
0x175c   :  { %s1336_s19 = smov (!%p891_p1, %s867_s19), %s1334_s17 }
0x175d   :  { %s893_s0 = sor.u32 1, %s1336_s19 }
0x175e   :  { %v894_v9 = vstv %s893_s0 }
0x175f   :  { %vm895_vm6 = vcmp.ge.s32.totalorder %v1227_v48, %v894_v9 }
0x1760   :  { %v896_v10 = vsel %vm895_vm6, 1, %v1145_v61 }
0x1761   :  { %v897_v11 = vsel %vm116_vm5, %v896_v10, 0 }
0x1762   :  { %v899_v12 = vshrl.u32 %v897_v11, 16  ;;  %v898_v13 = vand.u32 65535, %v897_v11 }
0x1764   :  { %v901_v14 = vcvt.s32.f32 %v899_v12  ;;  %v900_v15 = vcvt.s32.f32 %v898_v13 }
0x1766   :  { %904 = vadd.xlane.f32.xlu0 %v901_v14  ;;  %902 = vadd.xlane.f32.xlu1 %v900_v15 }
0x17d9   :  { %v905_v16 = vpop.xlane.xlu0 %904  ;;  %v903_v17 = vpop.xlane.xlu1 %902 }
0x17da   :  { %v907_v18 = vcvt.f32.s32 %v905_v16  ;;  %v906_v20 = vcvt.f32.s32 %v903_v17 }
0x17dc   :  { %v908_v19 = vshll.u32 %v907_v18, 16 }
0x17de   :  { %v909_v21 = vadd.s32 %v908_v19, %v906_v20 }
0x17e0   :  { %v910_v22 = vrot.slane %v909_v21, 4 }
0x17e2   :  { %v911_v23 = vadd.s32 %v910_v22, %v909_v21 }
0x17e4   :  { %v912_v24 = vrot.slane %v911_v23, 2 }
0x17e6   :  { %v913_v25 = vadd.s32 %v912_v24, %v911_v23 }
0x17e8   :  { %v914_v26 = vrot.slane %v913_v25, 1 }
0x17ea   :  { %v915_v27 = vadd.s32 %v914_v26, %v913_v25 }
0x17ec   :  { %1049 = vpush %v915_v27 }
0x181d   :  { %s1050_s1 = spop %1049 }
0x181e   :  { %p917_p2 = scmp.ge.s32.totalorder %s1050_s1, 6 }
0x1820   :  { %s1338_s0 = smov (!%p917_p2, %s893_s0), %s1336_s19 }
0x1821   :  { %v919_v28 = vstv %s1338_s0 }
0x1822   :  { %vm920_vm7 = vcmp.gt.s32.totalorder %v1227_v48, %v919_v28  ;;  %vm954_vm8 = vcmp.le.s32.totalorder %v1227_v48, %v919_v28 }
0x1823   :  { %v921_v29 = vsel %vm920_vm7, %v1227_v48, 0.0  ;;  %v932_v30 = vsel %vm920_vm7, 1, %v1145_v61  ;;  %v955_v37 = vsel %vm954_vm8, %v1227_v48, 0.0 }
0x1824   :  { %v922_v31 = vsel %vm116_vm5, %v921_v29, 0.0  ;;  %v933_v32 = vsel %vm116_vm5, %v932_v30, 0  ;;  %v956_v38 = vsel %vm116_vm5, %v955_v37, -inf }
0x1825   :  { %923 = vadd.xlane.f32.xlu1 %v922_v31  ;;  %v935_v33 = vshrl.u32 %v933_v32, 16  ;;  %v934_v34 = vand.u32 65535, %v933_v32 }
0x1827   :  { %v937_v35 = vcvt.s32.f32 %v935_v33  ;;  %v936_v36 = vcvt.s32.f32 %v934_v34 }
0x1829   :  { %940 = vadd.xlane.f32.xlu2 %v937_v35  ;;  %938 = vadd.xlane.f32.xlu0 %v936_v36 }
0x1831   :  { %957 = vmax.xlane.f32.xlu2 %v956_v38 }
0x1898   :  { %v924_v39 = vpop.xlane.xlu1 %923 }
0x1899   :  { %v925_v61 = vrot.slane %v924_v39, 4 }
0x189b   :  { %v926_v40 = vadd.f32 %v925_v61, %v924_v39 }
0x189c   :  { %v941_v41 = vpop.xlane.xlu2 %940  ;;  %v939_v42 = vpop.xlane.xlu0 %938 }
0x189d   :  { %v927_v43 = vrot.slane %v926_v40, 2  ;;  %v943_v44 = vcvt.f32.s32 %v941_v41  ;;  %v942_v46 = vcvt.f32.s32 %v939_v42 }
0x189f   :  { %v928_v60 = vadd.f32 %v927_v43, %v926_v40  ;;  %v944_v45 = vshll.u32 %v943_v44, 16 }
0x18a1   :  { %v945_v47 = vadd.s32 %v944_v45, %v942_v46  ;;  %v929_v49 = vrot.slane %v928_v60, 1 }
0x18a3   :  { %v946_v50 = vrot.slane %v945_v47, 4  ;;  %v930_v51 = vadd.f32 %v929_v49, %v928_v60 }
0x18a4   :  { %v958_v52 = vpop.xlane.xlu2 %957 }
0x18a5   :  { %v947_v53 = vadd.s32 %v946_v50, %v945_v47  ;;  %v959_v48 = vrot.slane %v958_v52, 4  ;;  %1051 = vpush %v930_v51 }
0x18a7   :  { %v960_v54 = vmax.f32 %v958_v52, %v959_v48  ;;  %v948_v55 = vrot.slane %v947_v53, 2 }
0x18a9   :  { %v961_v56 = vrot.slane %v960_v54, 2  ;;  %v949_v57 = vadd.s32 %v948_v55, %v947_v53 }
0x18ab   :  { %v962_v58 = vmax.f32 %v960_v54, %v961_v56  ;;  %v950_v59 = vrot.slane %v949_v57, 1 }
0x18ad   :  { %v951_v62 = vadd.s32 %v950_v59, %v949_v57  ;;  %v963_v63 = vrot.slane %v962_v58, 1 }
0x18af   :  { %1053 = vpush %v951_v62  ;;  %v964_v0 = vmax.f32 %v962_v58, %v963_v63 }
0x18b1   :  { %1055 = vpush %v964_v0 }
0x18d6   :  { %s1052_s21 = spop %1051 }
0x18e0   :  { %s1054_s22 = spop %1053 }
0x18e1   :  { %s953_s23 = scvt.s32.f32 %s1054_s22 }
0x18e2   :  { %s1056_s25 = spop %1055 }
0x18e3   :  { %s966_s24 = ssub.f32 6.0, %s953_s23 }
0x18e5   :  { %s967_s26 = smul.f32 %s1056_s25, %s966_s24 }
0x18e7   :  { %s968_s30 = sadd.f32 %s1052_s21, %s967_s26 }
0x18e9   :  { %s969_s3 = smul.f32 0.16666667, %s968_s30 }
0x18eb   :  { %971 = sst [smem:[#allocation8]] %s969_s3 }
0x18ec   :  { %980 = dma.smem_to_hbm %s1146_s4, 16, %s978_s29, [#allocation5]  }
0x18ed   :  { %1139 = dma.done.wait [#allocation5], 16  }
0x18ee   :  { %1140 = vsyncadd [#allocation5], 4294967280 }
0x18ef   :  { %985 = sfence }
0x18f0   :  { %986 = vsyncpa [#allocation4], 1 }
0x18f1   :  { %987 = vsyncpa [#allocation7], 1 }
0x18f2   :  { %988 = vsyncpa [#allocation5], 1 }

</bundles_post_ra>
